<compile_context>
chip_gen: v6e
topology: v6e:2x2x1
jax: 0.10.0
libtpu: 0.0.40
codegen_flags: <defaults>
</compile_context>

<pallas_src>
import numpy as np
import jax
import jax.numpy as jnp
from jax import lax
from jax.experimental import pallas as pl
from jax.experimental.pallas import tpu as pltpu


# ----------------------------- tiling helpers --------------------------------

def _largest_divisor_leq(n, cap):
    cap = max(1, min(n, cap))
    for d in range(cap, 0, -1):
        if n % d == 0:
            return d
    return 1


def _pick_conv_row_tile(H, W, Cin, Cout, budget_bytes):
    # Rough f32 per-output-row footprint inside the kernel:
    #   padded input row + (W, 3*Cin) patch row + output row.
    per_row = 4 * ((W + 2) * Cin + 3 * W * Cin + W * Cout)
    cap = max(1, budget_bytes // max(per_row, 1))
    return _largest_divisor_leq(H, cap)


def _pick_relu_row_tile(H, W, C, budget_bytes=2 << 20):
    per_row = 4 * 2 * W * C
    cap = max(1, budget_bytes // max(per_row, 1))
    return _largest_divisor_leq(H, cap)


def _pick_pool_row_tile(Ho, W, C, budget_bytes=2 << 20):
    per_row = 4 * (2 * W * C + (W // 2) * C)   # 2 input rows + 1 output row
    cap = max(1, budget_bytes // max(per_row, 1))
    return _largest_divisor_leq(Ho, cap)


# ------------------------------ Pallas kernels --------------------------------

def _make_conv3x3_kernel(T, W, Cin, Cout, apply_relu):
    """3x3 'same' conv on one row tile, fused bias (+ ReLU).

    xm_ref : (1, T,   W+2, Cin)  main padded row block
    xlo_ref: (1, 1,   W+2, Cin)  halo row just below the block
    xhi_ref: (1, 1,   W+2, Cin)  second halo row
    w_ref  : (3, 3*Cin, Cout)    weights, (kh, kw*Cin, Cout)
    b_ref  : (1, Cout)
    o_ref  : (1, T, W, Cout)
    """
    def kernel(xm_ref, xlo_ref, xhi_ref, w_ref, b_ref, o_ref):
        # Assemble (T+2, W+2, Cin) padded window (value-level only, no dynamic
        # ref indexing anywhere in this kernel).
        xfull = jnp.concatenate([xm_ref[...], xlo_ref[...], xhi_ref[...]],
                                axis=1).reshape(T + 2, W + 2, Cin)
        w = w_ref[...]                                         # (3, 3*Cin, Cout)

        acc = jnp.zeros((T * W, Cout), jnp.float32)
        for kh in range(3):                                    # static 3 taps
            xk = xfull[kh:kh + T]                              # (T, W+2, Cin)
            # K = 3*Cin patch: columns shifted by kw=0,1,2 stacked on lanes.
            patch = jnp.concatenate(
                [xk[:, 0:W, :], xk[:, 1:W + 1, :], xk[:, 2:W + 2, :]],
                axis=-1)                                       # (T, W, 3*Cin)
            acc = acc + jnp.dot(patch.reshape(T * W, 3 * Cin), w[kh],
                                preferred_element_type=jnp.float32)

        out = acc + b_ref[...]                                 # bias in f32
        if apply_relu:
            out = jnp.maximum(out, 0.0)                        # fused ReLU
        o_ref[...] = out.reshape(1, T, W, Cout).astype(o_ref.dtype)

    return kernel


def _relu_kernel(x_ref, o_ref):
    o_ref[...] = jnp.maximum(x_ref[...], 0.0).astype(o_ref.dtype)


def _maxpool2x2_kernel(x_ref, o_ref):
    """2x2 / stride-2 max pool on one row tile (dense loads, no strided ds).
    x_ref: (1, 2*tp, 2*Wo, C), o_ref: (1, tp, Wo, C)
    """
    _, tp, Wo, C = o_ref.shape
    x = x_ref[...]                               # (1, 2*tp, 2*Wo, C)
    x = x.reshape(tp, 2, 2 * Wo, C)
    x = jnp.max(x, axis=1)                       # vertical 2:1 -> (tp, 2*Wo, C)
    x = x.reshape(tp, Wo, 2 * C)                 # adjacent column pairs on lanes
    y = jnp.maximum(x[:, :, :C], x[:, :, C:])    # horizontal 2:1 -> (tp, Wo, C)
    o_ref[...] = y.reshape(1, tp, Wo, C).astype(o_ref.dtype)


# ------------------------------ layer wrappers --------------------------------

def conv3x3_same(x, w_hwio, b, apply_relu=False, row_tile_budget=4 << 20):
    """x: (N,H,W,Cin) f32; w_hwio: (3,3,Cin,Cout); b: (Cout,)."""
    N, H, W, Cin = x.shape
    Cout = w_hwio.shape[-1]
    T = _pick_conv_row_tile(H, W, Cin, Cout, row_tile_budget)
    n_row_tiles = H // T

    # 1-pixel zero halo (note: could be folded into the kernel with masked
    # border loads to save this HBM copy; kept for simplicity/robustness).
    xp = jnp.pad(x, ((0, 0), (1, 1), (1, 1), (0, 0)))
    w2 = w_hwio.reshape(3, 3 * Cin, Cout)
    b2 = b.reshape(1, Cout)

    # VMEM budget: double-buffered blocks + in-kernel patch intermediates.
    block_bytes = 4 * (T * (W + 2) * Cin + 2 * (W + 2) * Cin
                       + 9 * Cin * Cout + Cout + T * W * Cout)
    inter_bytes = 4 * ((T + 2) * (W + 2) * Cin + 3 * T * W * Cin
                       + 2 * T * W * Cout)
    vmem_limit = int(min(64 * 1024 * 1024,
                         max(16 * 1024 * 1024, 2 * block_bytes + inter_bytes)))

    kernel = _make_conv3x3_kernel(T, W, Cin, Cout, apply_relu)
    return pl.pallas_call(
        kernel,
        out_shape=jax.ShapeDtypeStruct((N, H, W, Cout), x.dtype),
        grid=(N, n_row_tiles),
        in_specs=[
            # main row tile: padded rows [ht*T, ht*T + T)
            pl.BlockSpec((1, T, W + 2, Cin), lambda n, ht: (n, ht, 0, 0)),
            # 2-row halo below the tile, one row per spec (block size 1 on H
            # => the index map is in row units, so no overlapping blocks).
            pl.BlockSpec((1, 1, W + 2, Cin),
                         lambda n, ht: (n, (ht + 1) * T, 0, 0)),
            pl.BlockSpec((1, 1, W + 2, Cin),
                         lambda n, ht: (n, (ht + 1) * T + 1, 0, 0)),
            pl.BlockSpec((3, 3 * Cin, Cout), lambda n, ht: (0, 0, 0)),
            pl.BlockSpec((1, Cout), lambda n, ht: (0, 0)),
        ],
        out_specs=pl.BlockSpec((1, T, W, Cout), lambda n, ht: (n, ht, 0, 0)),
        compiler_params=pltpu.CompilerParams(
            dimension_semantics=("parallel", "parallel"),
            vmem_limit_bytes=vmem_limit),
    )(xp, xp, xp, w2, b2)


def relu(x):
    N, H, W, C = x.shape
    th = _pick_relu_row_tile(H, W, C)
    return pl.pallas_call(
        _relu_kernel,
        out_shape=jax.ShapeDtypeStruct(x.shape, x.dtype),
        grid=(N, H // th),
        in_specs=[pl.BlockSpec((1, th, W, C), lambda n, i: (n, i, 0, 0))],
        out_specs=pl.BlockSpec((1, th, W, C), lambda n, i: (n, i, 0, 0)),
        compiler_params=pltpu.CompilerParams(
            dimension_semantics=("parallel", "parallel")),
    )(x)


def maxpool2x2(x):
    N, H, W, C = x.shape
    Ho, Wo = H // 2, W // 2
    if H != 2 * Ho or W != 2 * Wo:           # PyTorch MaxPool2d(2,2) floors
        x = x[:, :2 * Ho, :2 * Wo, :]
    tp = _pick_pool_row_tile(Ho, 2 * Wo, C)
    return pl.pallas_call(
        _maxpool2x2_kernel,
        out_shape=jax.ShapeDtypeStruct((N, Ho, Wo, C), x.dtype),
        grid=(N, Ho // tp),
        in_specs=[pl.BlockSpec((1, 2 * tp, 2 * Wo, C),
                               lambda n, j: (n, j, 0, 0))],
        out_specs=pl.BlockSpec((1, tp, Wo, C), lambda n, j: (n, j, 0, 0)),
        compiler_params=pltpu.CompilerParams(
            dimension_semantics=("parallel", "parallel")),
    )(x)


# ------------------------------ VGG_Activations --------------------------------

class VGGActivationsPallas:
    """Pallas equivalent of VGG_Activations: runs the `features` list layer by
    layer, collecting the activation after every index in `feature_idx`
    (same 0-based `ii in idx_list` semantics as the PyTorch forward).
    Conv + following ReLU are fused whenever the conv's own index is not
    requested (so pre-activation collection still works)."""

    def __init__(self, features, feature_idx):
        self.features = features            # list of (kind, params)
        self.idx_list = list(feature_idx)

    def __call__(self, x_nchw):
        x = jnp.transpose(x_nchw, (0, 2, 3, 1))              # NCHW -> NHWC
        results = []
        ii = 0
        n = len(self.features)
        while ii < n:
            kind, params = self.features[ii]
            fuse = (kind == "conv" and ii + 1 < n
                    and self.features[ii + 1][0] == "relu"
                    and ii not in self.idx_list)
            if fuse:
                w, b = params
                x = conv3x3_same(x, w, b, apply_relu=True)   # fused conv+ReLU
                if ii + 1 in self.idx_list:
                    results.append(jnp.transpose(x, (0, 3, 1, 2)))
                ii += 2
                continue
            if kind == "conv":
                w, b = params
                x = conv3x3_same(x, w, b, apply_relu=False)
            elif kind == "relu":
                x = relu(x)
            elif kind == "maxpool":
                x = maxpool2x2(x)
            else:
                raise ValueError(kind)
            if ii in self.idx_list:
                results.append(jnp.transpose(x, (0, 3, 1, 2)))
            ii += 1
        return results


# ---------------------------- reference (plain JAX) ----------------------------

def reference_forward(x_nchw, features, idx_list):
    x = jnp.transpose(x_nchw, (0, 2, 3, 1))
    results = []
    for ii, (kind, params) in enumerate(features):
        if kind == "conv":
            w, b = params
            x = lax.conv_general_dilated(
                x, w, window_strides=(1, 1), padding="SAME",
                dimension_numbers=("NHWC", "HWIO", "NHWC")) + b
        elif kind == "relu":
            x = jnp.maximum(x, 0.0)
        elif kind == "maxpool":
            x = lax.reduce_window(x, -jnp.inf, lax.max,
                                  (1, 2, 2, 1), (1, 2, 2, 1), "VALID")
        if ii in idx_list:
            results.append(jnp.transpose(x, (0, 3, 1, 2)))
    return results


def make_conv_params(key, cin, cout):
    kw_, kb_ = jax.random.split(key)
    # PyTorch Conv2d weight layout is (Cout, Cin, kH, kW); convert to HWIO.
    w_oihw = 0.1 * jax.random.normal(kw_, (cout, cin, 3, 3), jnp.float32)
    b = 0.1 * jax.random.normal(kb_, (cout,), jnp.float32)
    w_hwio = jnp.transpose(w_oihw, (2, 3, 1, 0))
    return w_hwio, b


if __name__ == "__main__":
    key = jax.random.PRNGKey(0)
    kx, k0, k1, k2 = jax.random.split(key, 4)

    # Small synthetic "vgg_network.features" stack (deterministic params):
    #   0: Conv2d(3, 8, 3, padding=1)   1: ReLU
    #   2: Conv2d(8, 8, 3, padding=1)   3: ReLU
    #   4: MaxPool2d(2, 2)
    #   5: Conv2d(8, 16, 3, padding=1)  6: ReLU
    features = [
        ("conv", make_conv_params(k0, 3, 8)),
        ("relu", None),
        ("conv", make_conv_params(k1, 8, 8)),
        ("relu", None),
        ("maxpool", None),
        ("conv", make_conv_params(k2, 8, 16)),
        ("relu", None),
    ]
    # Collect after a fused ReLU (1), a bare conv (2, pre-ReLU activation) and
    # the final fused ReLU (6): exercises fused conv+ReLU, standalone conv,
    # standalone ReLU and the maxpool kernels.
    feature_idx = [1, 2, 6]

    model = VGGActivationsPallas(features, feature_idx)

    x = jax.random.normal(kx, (2, 3, 16, 16), jnp.float32)   # NCHW like PyTorch

    outs = model(x)
    outs = jax.block_until_ready(outs)

    refs = reference_forward(x, features, feature_idx)
    assert len(outs) == len(refs) == len(feature_idx)
    for o, r in zip(outs, refs):
        assert o.shape == r.shape, (o.shape, r.shape)
        np.testing.assert_allclose(np.asarray(o), np.asarray(r),
                                   rtol=1e-4, atol=1e-4)

    print("KERNEL_OK")
</pallas_src>

<mosaic_0001>
module attributes {stable_mosaic.version = 11 : i64} {
  func.func @kernel(%arg0: i32, %arg1: i32, %arg2: memref<1x16x18x3xf32, #tpu.memory_space<vmem>>, %arg3: memref<1x1x18x3xf32, #tpu.memory_space<vmem>>, %arg4: memref<1x1x18x3xf32, #tpu.memory_space<vmem>>, %arg5: memref<3x9x8xf32, #tpu.memory_space<vmem>>, %arg6: memref<1x8xf32, #tpu.memory_space<vmem>>, %arg7: memref<1x16x16x8xf32, #tpu.memory_space<vmem>>) attributes {dimension_semantics = [#tpu.dimension_semantics<parallel>, #tpu.dimension_semantics<parallel>], iteration_bounds = array<i64: 2, 1>, scalar_prefetch = 0 : i64, scratch_operands = 0 : i64, tpu.core_type = #tpu.core_type<tc>, window_params = [{transform_indices = @transform_0, window_bounds = array<i64: 1, 16, 18, 3>}, {transform_indices = @transform_1, window_bounds = array<i64: 1, 1, 18, 3>}, {transform_indices = @transform_2, window_bounds = array<i64: 1, 1, 18, 3>}, {pipeline_mode = #tpu.pipeline_mode<synchronous>, transform_indices = @transform_3, window_bounds = array<i64: 3, 9, 8>}, {pipeline_mode = #tpu.pipeline_mode<synchronous>, transform_indices = @transform_4, window_bounds = array<i64: 1, 8>}, {transform_indices = @transform_5, window_bounds = array<i64: 1, 16, 16, 8>}]} {
    %c0 = arith.constant 0 : index
    %c0_0 = arith.constant 0 : index
    %c0_1 = arith.constant 0 : index
    %c0_2 = arith.constant 0 : index
    %0 = vector.load %arg2[%c0, %c0_0, %c0_1, %c0_2] : memref<1x16x18x3xf32, #tpu.memory_space<vmem>>, vector<1x16x18x3xf32>
    %c0_3 = arith.constant 0 : index
    %c0_4 = arith.constant 0 : index
    %c0_5 = arith.constant 0 : index
    %c0_6 = arith.constant 0 : index
    %1 = vector.load %arg3[%c0_3, %c0_4, %c0_5, %c0_6] : memref<1x1x18x3xf32, #tpu.memory_space<vmem>>, vector<1x1x18x3xf32>
    %c0_7 = arith.constant 0 : index
    %c0_8 = arith.constant 0 : index
    %c0_9 = arith.constant 0 : index
    %c0_10 = arith.constant 0 : index
    %2 = vector.load %arg4[%c0_7, %c0_8, %c0_9, %c0_10] : memref<1x1x18x3xf32, #tpu.memory_space<vmem>>, vector<1x1x18x3xf32>
    %3 = tpu.concatenate %0, %1, %2 in 1 : vector<1x16x18x3xf32>, vector<1x1x18x3xf32>, vector<1x1x18x3xf32> -> vector<1x18x18x3xf32>
    %4 = vector.shape_cast %3 : vector<1x18x18x3xf32> to vector<18x18x3xf32>
    %c0_11 = arith.constant 0 : index
    %c0_12 = arith.constant 0 : index
    %c0_13 = arith.constant 0 : index
    %5 = vector.load %arg5[%c0_11, %c0_12, %c0_13] : memref<3x9x8xf32, #tpu.memory_space<vmem>>, vector<3x9x8xf32>
    %cst = arith.constant 0.000000e+00 : f32
    %6 = vector.broadcast %cst : f32 to vector<256x8xf32>
    %7 = vector.extract_strided_slice %4 {offsets = [0, 0, 0], sizes = [16, 18, 3], strides = [1, 1, 1]} : vector<18x18x3xf32> to vector<16x18x3xf32>
    %8 = vector.extract_strided_slice %7 {offsets = [0, 0, 0], sizes = [16, 16, 3], strides = [1, 1, 1]} : vector<16x18x3xf32> to vector<16x16x3xf32>
    %9 = vector.extract_strided_slice %7 {offsets = [0, 1, 0], sizes = [16, 16, 3], strides = [1, 1, 1]} : vector<16x18x3xf32> to vector<16x16x3xf32>
    %10 = vector.extract_strided_slice %7 {offsets = [0, 2, 0], sizes = [16, 16, 3], strides = [1, 1, 1]} : vector<16x18x3xf32> to vector<16x16x3xf32>
    %11 = tpu.concatenate %8, %9, %10 in 2 : vector<16x16x3xf32>, vector<16x16x3xf32>, vector<16x16x3xf32> -> vector<16x16x9xf32>
    %12 = vector.shape_cast %11 : vector<16x16x9xf32> to vector<256x9xf32>
    %13 = vector.extract_strided_slice %5 {offsets = [0, 0, 0], sizes = [1, 9, 8], strides = [1, 1, 1]} : vector<3x9x8xf32> to vector<1x9x8xf32>
    %14 = vector.shape_cast %13 : vector<1x9x8xf32> to vector<9x8xf32>
    %cst_14 = arith.constant dense<0.000000e+00> : vector<256x8xf32>
    %15 = tpu.matmul %12, %14, %cst_14 {dimension_numbers = #tpu.dot_dimension_numbers<[1], [0], [0], [1], [0, 0, 1, 1], [], []>} : vector<256x9xf32>, vector<9x8xf32>, vector<256x8xf32> -> vector<256x8xf32>
    %16 = arith.addf %6, %15 : vector<256x8xf32>
    %17 = vector.extract_strided_slice %4 {offsets = [1, 0, 0], sizes = [16, 18, 3], strides = [1, 1, 1]} : vector<18x18x3xf32> to vector<16x18x3xf32>
    %18 = vector.extract_strided_slice %17 {offsets = [0, 0, 0], sizes = [16, 16, 3], strides = [1, 1, 1]} : vector<16x18x3xf32> to vector<16x16x3xf32>
    %19 = vector.extract_strided_slice %17 {offsets = [0, 1, 0], sizes = [16, 16, 3], strides = [1, 1, 1]} : vector<16x18x3xf32> to vector<16x16x3xf32>
    %20 = vector.extract_strided_slice %17 {offsets = [0, 2, 0], sizes = [16, 16, 3], strides = [1, 1, 1]} : vector<16x18x3xf32> to vector<16x16x3xf32>
    %21 = tpu.concatenate %18, %19, %20 in 2 : vector<16x16x3xf32>, vector<16x16x3xf32>, vector<16x16x3xf32> -> vector<16x16x9xf32>
    %22 = vector.shape_cast %21 : vector<16x16x9xf32> to vector<256x9xf32>
    %23 = vector.extract_strided_slice %5 {offsets = [1, 0, 0], sizes = [1, 9, 8], strides = [1, 1, 1]} : vector<3x9x8xf32> to vector<1x9x8xf32>
    %24 = vector.shape_cast %23 : vector<1x9x8xf32> to vector<9x8xf32>
    %cst_15 = arith.constant dense<0.000000e+00> : vector<256x8xf32>
    %25 = tpu.matmul %22, %24, %cst_15 {dimension_numbers = #tpu.dot_dimension_numbers<[1], [0], [0], [1], [0, 0, 1, 1], [], []>} : vector<256x9xf32>, vector<9x8xf32>, vector<256x8xf32> -> vector<256x8xf32>
    %26 = arith.addf %16, %25 : vector<256x8xf32>
    %27 = vector.extract_strided_slice %4 {offsets = [2, 0, 0], sizes = [16, 18, 3], strides = [1, 1, 1]} : vector<18x18x3xf32> to vector<16x18x3xf32>
    %28 = vector.extract_strided_slice %27 {offsets = [0, 0, 0], sizes = [16, 16, 3], strides = [1, 1, 1]} : vector<16x18x3xf32> to vector<16x16x3xf32>
    %29 = vector.extract_strided_slice %27 {offsets = [0, 1, 0], sizes = [16, 16, 3], strides = [1, 1, 1]} : vector<16x18x3xf32> to vector<16x16x3xf32>
    %30 = vector.extract_strided_slice %27 {offsets = [0, 2, 0], sizes = [16, 16, 3], strides = [1, 1, 1]} : vector<16x18x3xf32> to vector<16x16x3xf32>
    %31 = tpu.concatenate %28, %29, %30 in 2 : vector<16x16x3xf32>, vector<16x16x3xf32>, vector<16x16x3xf32> -> vector<16x16x9xf32>
    %32 = vector.shape_cast %31 : vector<16x16x9xf32> to vector<256x9xf32>
    %33 = vector.extract_strided_slice %5 {offsets = [2, 0, 0], sizes = [1, 9, 8], strides = [1, 1, 1]} : vector<3x9x8xf32> to vector<1x9x8xf32>
    %34 = vector.shape_cast %33 : vector<1x9x8xf32> to vector<9x8xf32>
    %cst_16 = arith.constant dense<0.000000e+00> : vector<256x8xf32>
    %35 = tpu.matmul %32, %34, %cst_16 {dimension_numbers = #tpu.dot_dimension_numbers<[1], [0], [0], [1], [0, 0, 1, 1], [], []>} : vector<256x9xf32>, vector<9x8xf32>, vector<256x8xf32> -> vector<256x8xf32>
    %36 = arith.addf %26, %35 : vector<256x8xf32>
    %c0_17 = arith.constant 0 : index
    %c0_18 = arith.constant 0 : index
    %37 = vector.load %arg6[%c0_17, %c0_18] : memref<1x8xf32, #tpu.memory_space<vmem>>, vector<1x8xf32>
    %38 = vector.broadcast %37 : vector<1x8xf32> to vector<256x8xf32>
    %39 = arith.addf %36, %38 : vector<256x8xf32>
    %cst_19 = arith.constant 0.000000e+00 : f32
    %40 = vector.broadcast %cst_19 : f32 to vector<256x8xf32>
    %41 = arith.maximumf %39, %40 : vector<256x8xf32>
    %42 = vector.shape_cast %41 : vector<256x8xf32> to vector<1x16x16x8xf32>
    %c0_20 = arith.constant 0 : index
    %c0_21 = arith.constant 0 : index
    %c0_22 = arith.constant 0 : index
    %c0_23 = arith.constant 0 : index
    %43 = vector.load %arg7[%c0_20, %c0_21, %c0_22, %c0_23] : memref<1x16x16x8xf32, #tpu.memory_space<vmem>>, vector<1x16x16x8xf32>
    tpu.vector_store %arg7[%c0_20, %c0_21, %c0_22, %c0_23], %42 {strides = array<i32>} : memref<1x16x16x8xf32, #tpu.memory_space<vmem>>, vector<1x16x16x8xf32>,
    return
  }
  func.func @transform_0(%arg0: i32, %arg1: i32) -> (i32, i32, i32, i32) {
    %c0_i32 = arith.constant 0 : i32
    %c0_i32_0 = arith.constant 0 : i32
    %c0_i32_1 = arith.constant 0 : i32
    return %arg0, %arg1, %c0_i32, %c0_i32_0 : i32, i32, i32, i32
  }
  func.func @transform_1(%arg0: i32, %arg1: i32) -> (i32, i32, i32, i32) {
    %c1_i32 = arith.constant 1 : i32
    %0 = arith.addi %arg1, %c1_i32 : i32
    %c16_i32 = arith.constant 16 : i32
    %1 = arith.muli %0, %c16_i32 : i32
    %c0_i32 = arith.constant 0 : i32
    %c0_i32_0 = arith.constant 0 : i32
    %c0_i32_1 = arith.constant 0 : i32
    return %arg0, %1, %c0_i32, %c0_i32_0 : i32, i32, i32, i32
  }
  func.func @transform_2(%arg0: i32, %arg1: i32) -> (i32, i32, i32, i32) {
    %c1_i32 = arith.constant 1 : i32
    %0 = arith.addi %arg1, %c1_i32 : i32
    %c16_i32 = arith.constant 16 : i32
    %1 = arith.muli %0, %c16_i32 : i32
    %c1_i32_0 = arith.constant 1 : i32
    %2 = arith.addi %1, %c1_i32_0 : i32
    %c0_i32 = arith.constant 0 : i32
    %c0_i32_1 = arith.constant 0 : i32
    %c0_i32_2 = arith.constant 0 : i32
    return %arg0, %2, %c0_i32, %c0_i32_1 : i32, i32, i32, i32
  }
  func.func @transform_3(%arg0: i32, %arg1: i32) -> (i32, i32, i32) {
    %c0_i32 = arith.constant 0 : i32
    %c0_i32_0 = arith.constant 0 : i32
    %c0_i32_1 = arith.constant 0 : i32
    %c0_i32_2 = arith.constant 0 : i32
    return %c0_i32, %c0_i32_0, %c0_i32_1 : i32, i32, i32
  }
  func.func @transform_4(%arg0: i32, %arg1: i32) -> (i32, i32) {
    %c0_i32 = arith.constant 0 : i32
    %c0_i32_0 = arith.constant 0 : i32
    %c0_i32_1 = arith.constant 0 : i32
    return %c0_i32, %c0_i32_0 : i32, i32
  }
  func.func @transform_5(%arg0: i32, %arg1: i32) -> (i32, i32, i32, i32) {
    %c0_i32 = arith.constant 0 : i32
    %c0_i32_0 = arith.constant 0 : i32
    %c0_i32_1 = arith.constant 0 : i32
    return %arg0, %arg1, %c0_i32, %c0_i32_0 : i32, i32, i32, i32
  }
}

</mosaic_0001>

<bundles_post_ra>
// kernel: tpu_custom_call.1
= control target key start
LH: loop header
LB: loop body
LE: loop exit
PB: predicated region body
PF: predicated region fallthrough
CT: control target
= control target key end

     0   :  { %s2515_s18 = smov 0   ;;  %s2517_s19 = smov 0   ;;  %s3573_s0 = inlined_call_operand.vmem [shape: f32[2,18,18,3], index: 0, kind: input, shape index: {}]   ;;  %s3574_s1 = inlined_call_operand.vmem [shape: f32[2,18,18,3], index: 1, kind: input, shape index: {}]   ;;  %s3575_s2 = inlined_call_operand.vmem [shape: f32[2,18,18,3], index: 2, kind: input, shape index: {}]   ;;  %s3576_s3 = inlined_call_operand.vmem [shape: f32[3,9,8], index: 3, kind: input, shape index: {}]   ;;  %s3577_s4 = inlined_call_operand.vmem [shape: f32[1,8], index: 4, kind: input, shape index: {}]   ;;  %s3578_s5 = inlined_call_operand.vmem [shape: f32[2,16,16,8], index: 5, kind: output, shape index: {}]  }
   0x1   :  { %s2519_s20 = smov 0  }
   0x2 LB: > { %s27_s21 = sadd.s32 1, %s2477_s19  ;;  %p2055_p0 = scmp.ge.s32.totalorder %s2481_s20, 1  ;;  %s2481_s20 = sphi %s2519_s20, %s15_s20   ;;  %s2477_s19 = sphi %s2517_s19, %s3590_s19   ;;  %s2473_s18 = sphi %s2515_s18, %s3589_s18  }
   0x3   : > { %p29_p1 = scmp.ge.s32.totalorder %s27_s21, 2  ;;  %p271_p2 = scmp.lt.s32.totalorder %s2481_s20, 3 }
   0x5   : > { %s3592_s21 = smov (%p29_p1, %s27_s21), 0  ;;  %p272_p3 = pnand %p2055_p0, %p271_p2 }
   0x6   : > { %p343_p4 = scmp.lt.s32.totalorder (!%p272_p3), %s2473_s18, 1  ;;  %s2483_s30 = smov (!%p272_p3), 6  }
   0x7   : > { %275 = sbr.rel (%p272_p3) target bundleno = 533 (0x215), region = 40  ;;  %s2484_s6 = smov (!%p272_p3), 3  }
   0xc   : > { %s3594_s18 = smov (!%p343_p4, %s2473_s18), 1  ;;  %v454_v0 = vld [vmem:[%s3576_s3 + $0x18] sm:$0x1]  ;;  %vm1051_vm0 = vcmask 1040384   ;;  %v453_v1 = vld [vmem:[%s3576_s3 + $0x10] sm:$0xff]  ;;  %vm682_vm1 = vcmask 1045504  }
   0xd   : > { %2426 = vmatprep.subr.msk.mxu1 %vm1051_vm0, %v454_v0  ;;  %2270 = vmatprep.subr.msk.mxu0 %vm1051_vm0, %v454_v0  ;;  %s2544_s26 = smul.u32 432, %s3594_s18  ;;  %vm505_vm2 = vcmask 1046528   ;;  %vm859_vm3 = vcmask 23552   ;;  %vm892_vm4 = vcmask 48128   ;;  %vm954_vm5 = vcmask 72704  }
   0xe   : > { %2428 = vmatpush3.msk.msra.mxu1 %vm1051_vm0, %v454_v0  ;;  %2271 = vmatpush3.msk.msra.mxu0 %vm1051_vm0, %v454_v0  ;;  %vm1880_vm6 = vcmask 64512  }
   0xf   : > { %2427 = vmatprep.subr.mxu1 %v453_v1  ;;  %2272 = vmatprep.subr.mxu0 %v453_v1  ;;  %s2552_s29 = scalar_lea.vmem %s3573_s0, %s2544_s26  ;;  %s2164_s7 = sadd.s32 384, %s2544_s26 }
  0x10   : > { %2429 = vmatpush3.msra.mxu1 %v453_v1  ;;  %2273 = vmatpush3.msra.mxu0 %v453_v1  ;;  %v2555_v2 = vld [vmem:[%s2552_s29 + $0xd8] sm:$0xff]  ;;  %v2558_v3 = vld [vmem:[%s2552_s29 + $0xe0] sm:$0xff]  ;;  %v426_v4 = vld [vmem:[%s2552_s29 + $0xe8] sm:$0x3]  ;;  %s2700_s10 = scalar_lea.vmem %s3574_s1, %s2164_s7  ;;  %s2166_s11 = sadd.s32 408, %s2544_s26 }
  0x11   : > { %v728_v5 = vrot.slane %v2555_v2, 2  ;;  %v729_v6 = vrot.slane %v2558_v3, 2  ;;  %v551_v7 = vrot.slane %v2555_v2, 1  ;;  %v552_v8 = vrot.slane %v2558_v3, 1  ;;  %v2566_v9 = vld [vmem:[%s2552_s29 + $0x18] sm:$0xff]  ;;  %v2569_v10 = vld [vmem:[%s2552_s29 + $0x20] sm:$0xff]  ;;  %s2831_s14 = scalar_lea.vmem %s3575_s2, %s2166_s11 }
  0x12   : > { %v554_v11 = vrot.slane %v426_v4, 1  ;;  %v511_v12 = vrot.slane %v2566_v9, 1  ;;  %v512_v13 = vrot.slane %v2569_v10, 1  ;;  %v402_v14 = vld [vmem:[%s2552_s29 + $0x28] sm:$0x3]  ;;  %v731_v17 = vrot.slane %v426_v4, 2 }
  0x13   : > { %v730_v15 = vsel %vm682_vm1, %v728_v5, %v729_v6  ;;  %v553_v16 = vsel %vm505_vm2, %v551_v7, %v552_v8  ;;  %v514_v20 = vrot.slane %v402_v14, 1  ;;  %v2581_v21 = vld [vmem:[%s2552_s29 + $0xf0] sm:$0xff]  ;;  %v2584_v22 = vld [vmem:[%s2552_s29 + $0xf8] sm:$0xff]  ;;  %v688_v24 = vrot.slane %v2566_v9, 2  ;;  %v429_v29 = vld [vmem:[%s2552_s29 + $0x100] sm:$0x3] }
  0x14   : > { %799 = vrot.lane.b32.xlu1 %v730_v15, %s2483_s30  ;;  %622 = vrot.lane.b32.xlu0 %v553_v16, %s2484_s6  ;;  %v555_v18 = vsel %vm505_vm2, %v552_v8, %v554_v11  ;;  %v513_v19 = vsel %vm505_vm2, %v511_v12, %v512_v13  ;;  %v732_v23 = vsel %vm682_vm1, %v729_v6, %v731_v17  ;;  %v689_v26 = vrot.slane %v2569_v10, 2  ;;  %v2600_v34 = vld [vmem:[%s2552_s29 + $0x30] sm:$0xff]  ;;  %v2603_v35 = vld [vmem:[%s2552_s29 + $0x38] sm:$0xff] }
  0x15   : > { %v515_v25 = vsel %vm505_vm2, %v512_v13, %v514_v20  ;;  %v556_v27 = vrot.slane %v2581_v21, 1  ;;  %v557_v28 = vrot.slane %v2584_v22, 1  ;;  %v691_v32 = vrot.slane %v402_v14, 2  ;;  %v405_v42 = vld [vmem:[%s2552_s29 + $0x40] sm:$0x3]  ;;  %v2631_v51 = vld [vmem:[%s2552_s29 + $0x108] sm:$0xff] }
  0x16   : > { %v690_v30 = vsel %vm682_vm1, %v688_v24, %v689_v26  ;;  %v559_v33 = vrot.slane %v429_v29, 1  ;;  %v733_v36 = vrot.slane %v2581_v21, 2  ;;  %v734_v37 = vrot.slane %v2584_v22, 2  ;;  %v2615_v43 = vld [vmem:[%s2552_s29 + $0x140] sm:$0xff]  ;;  %v2618_v44 = vld [vmem:[%s2552_s29 + $0x148] sm:$0x3] }
  0x17   : > { %v558_v31 = vsel %vm505_vm2, %v556_v27, %v557_v28  ;;  %v692_v38 = vsel %vm682_vm1, %v689_v26, %v691_v32  ;;  %v516_v40 = vrot.slane %v2600_v34, 1  ;;  %v517_v41 = vrot.slane %v2603_v35, 1  ;;  %v2624_v47 = vld [vmem:[%s2552_s29 + $0x80] sm:$0xff]  ;;  %v2627_v48 = vld [vmem:[%s2552_s29 + $0x88] sm:$0x3]  ;;  %v2636_v54 = vld [vmem:[%s2552_s29 + $0x110] sm:$0xff] }
  0x18   : > { %624 = vrot.lane.b32.xlu0 %v555_v18, %s2484_s6  ;;  %590 = vrot.lane.b32.xlu1 %v513_v19, %s2484_s6  ;;  %v560_v39 = vsel %vm505_vm2, %v557_v28, %v559_v33  ;;  %v735_v45 = vsel %vm682_vm1, %v733_v36, %v734_v37  ;;  %v736_v46 = vrot.slane %v429_v29, 2  ;;  %v519_v50 = vrot.slane %v405_v42, 1  ;;  %v2646_v58 = vld [vmem:[%s2552_s29 + $0x158] sm:$0xff]  ;;  %v2649_v59 = vld [vmem:[%s2552_s29 + $0x160] sm:$0x3] }
  0x19   : > { %v518_v49 = vsel %vm505_vm2, %v516_v40, %v517_v41  ;;  %v572_v52 = vrot.slane %v2615_v43, 1  ;;  %v574_v53 = vrot.slane %v2618_v44, 1  ;;  %v532_v56 = vrot.slane %v2624_v47, 1  ;;  %v2665_v5 = vld [vmem:[%s2552_s29 + $0x98] sm:$0xff]  ;;  %v2668_v6 = vld [vmem:[%s2552_s29 + $0xa0] sm:$0x3] }
  0x1a   : > { %v534_v57 = vrot.slane %v2627_v48, 1  ;;  %v693_v60 = vrot.slane %v2600_v34, 2  ;;  %v694_v61 = vrot.slane %v2603_v35, 2  ;;  %v561_v62 = vrot.slane %v2631_v51, 1  ;;  %v432_v7 = vld [vmem:[%s2552_s29 + $0x118] sm:$0x3] }
  0x1b   : > { %v2641_v55 = vsel %vm505_vm2, %v572_v52, %v574_v53  ;;  %v737_v63 = vsel %vm682_vm1, %v734_v37, %v736_v46  ;;  %v520_v0 = vsel %vm505_vm2, %v517_v41, %v519_v50  ;;  %v562_v1 = vrot.slane %v2636_v54, 1  ;;  %v2684_v16 = vld [vmem:[%s2552_s29 + $0x170] sm:$0xff]  ;;  %v2687_v17 = vld [vmem:[%s2552_s29 + $0x178] sm:$0x3]  ;;  %v2723_v37 = vld [vmem:[%s2700_s10 + $0x8] sm:$0xff] }
  0x1c   : > { %801 = vrot.lane.b32.xlu0 %v732_v23, %s2483_s30  ;;  %592 = vrot.lane.b32.xlu1 %v515_v25, %s2484_s6  ;;  %v2662_v4 = vsel %vm505_vm2, %v532_v56, %v534_v57  ;;  %v577_v8 = vrot.slane %v2646_v58, 1  ;;  %v579_v11 = vrot.slane %v2649_v59, 1  ;;  %v696_v12 = vrot.slane %v405_v42, 2  ;;  %v2692_v23 = vld [vmem:[%s2552_s29 + $0x48] sm:$0xff]  ;;  %v2695_v24 = vld [vmem:[%s2552_s29 + $0x50] sm:$0xff] }
  0x1d   : > { %v537_v14 = vrot.slane %v2665_v5, 1  ;;  %v539_v15 = vrot.slane %v2668_v6, 1  ;;  %v695_v18 = vsel %vm682_vm1, %v693_v60, %v694_v61  ;;  %v563_v19 = vsel %vm505_vm2, %v561_v62, %v562_v1  ;;  %v2708_v26 = vld [vmem:[%s2552_s29 + $0xb0] sm:$0xff]  ;;  %v2711_v27 = vld [vmem:[%s2552_s29 + $0xb8] sm:$0x3]  ;;  %v2744_v50 = vld [vmem:[%s2552_s29 + $0xc8] sm:$0xff] }
  0x1e   : > { %v2679_v13 = vsel %vm505_vm2, %v577_v8, %v579_v11  ;;  %v564_v20 = vrot.slane %v432_v7, 1  ;;  %v738_v28 = vrot.slane %v2631_v51, 2  ;;  %v3583_v29 = vrot.slane %v2684_v16, 1  ;;  %v2734_v42 = vld [vmem:[%s2700_s10 + $0x10] sm:$0x3] }
  0x1f   : > { %v2705_v25 = vsel %vm505_vm2, %v537_v14, %v539_v15  ;;  %v739_v32 = vrot.slane %v2636_v54, 2  ;;  %v521_v33 = vrot.slane %v2692_v23, 1  ;;  %v522_v36 = vrot.slane %v2695_v24, 1  ;;  %v2747_v53 = vld [vmem:[%s2552_s29 + $0xd0] sm:$0x3]  ;;  %v2768_v15 = vld [vmem:[%s2552_s29 + $0x8] sm:$0xff] }
  0x20   : > { %767 = vrot.lane.b32.xlu0 %v690_v30, %s2483_s30  ;;  %626 = vrot.lane.b32.xlu1 %v558_v31, %s2484_s6  ;;  %v584_v30 = vrot.slane %v2687_v17, 1  ;;  %v697_v31 = vsel %vm682_vm1, %v694_v61, %v696_v12  ;;  %v3582_v40 = vrot.slane %v2708_v26, 1  ;;  %v544_v41 = vrot.slane %v2711_v27, 1 }
  0x21   : > { %v741_v57 = vrot.slane %v432_v7, 2  ;;  %v931_v60 = vrot.slane %v2734_v42, 1  ;;  %v740_v61 = vsel %vm682_vm1, %v738_v28, %v739_v32  ;;  %v523_v62 = vsel %vm505_vm2, %v521_v33, %v522_v36 }
  0x22   : > { %v2740_v46 = vsel %vm505_vm2, %v3582_v40, %v544_v41  ;;  %v3579_v12 = vrot.slane %v2744_v50, 1  ;;  %v549_v7 = vrot.slane %v2747_v53, 1  ;;  %v699_v28 = vrot.slane %v2695_v24, 2 }
  0x23   : > { %v3580_v41 = vrot.slane %v2768_v15, 1 }
  0x24   : > { %769 = vrot.lane.b32.xlu0 %v692_v38, %s2483_s30  ;;  %628 = vrot.lane.b32.xlu1 %v560_v39, %s2484_s6  ;;  %v565_v38 = vsel %vm505_vm2, %v562_v1, %v564_v20  ;;  %v2729_v39 = vsel %vm505_vm2, %v3583_v29, %v584_v30  ;;  %v2758_v1 = vld [vmem:[%s2552_s29 + $0x128] sm:$0xff]  ;;  %v742_v20 = vsel %vm682_vm1, %v739_v32, %v741_v57  ;;  %v435_v32 = vld [vmem:[%s2552_s29 + $0x130] sm:$0x3] }
  0x25   : > { %v2818_v29 = vld [vmem:[%s2552_s29 + $0x138] sm:$0xff] }
  0x28   : > { %803 = vrot.lane.b32.xlu0 %v735_v45, %s2483_s30  ;;  %594 = vrot.lane.b32.xlu1 %v518_v49, %s2484_s6  ;;  %v408_v45 = vld [vmem:[%s2552_s29 + $0x58] sm:$0x3]  ;;  %v3581_v49 = vrot.slane %v2723_v37, 1 }
  0x2a   : > { %v2763_v11 = vsel %vm505_vm2, %v3581_v49, %v931_v60  ;;  %v746_v49 = vrot.slane %v435_v32, 2 }
  0x2c   : > { %805 = vrot.lane.b32.xlu0 %v737_v63, %s2483_s30  ;;  %596 = vrot.lane.b32.xlu1 %v520_v0, %s2484_s6  ;;  %v524_v63 = vrot.slane %v408_v45, 1  ;;  %v2755_v0 = vld [vmem:[%s2552_s29 + $0x120] sm:$0xff] }
  0x2d   : > { %v566_v30 = vrot.slane %v2755_v0, 1 }
  0x2e   : > { %v525_v33 = vsel %vm505_vm2, %v522_v36, %v524_v63  ;;  %v569_v63 = vrot.slane %v435_v32, 1  ;;  %v2836_v32 = vld [vmem:[%s2831_s14 + $0x8] sm:$0xff] }
  0x30   : > { %771 = vrot.lane.b32.xlu0 %v695_v18, %s2483_s30  ;;  %630 = vrot.lane.b32.xlu1 %v563_v19, %s2484_s6  ;;  %v2771_v18 = vld [vmem:[%s2552_s29 + $0x10] sm:$0x3]  ;;  %v698_v19 = vrot.slane %v2692_v23, 2 }
  0x31   : > { %v509_v60 = vrot.slane %v2771_v18, 1 }
  0x33   : > { %v2792_v57 = vsel %vm505_vm2, %v3580_v41, %v509_v60  ;;  %v744_v60 = vrot.slane %v2758_v1, 2  ;;  %v411_v41 = vld [vmem:[%s2552_s29 + $0x70] sm:$0x3] }
  0x34   : > { %773 = vrot.lane.b32.xlu0 %v697_v31, %s2483_s30  ;;  %632 = vrot.lane.b32.xlu1 %v565_v38, %s2484_s6  ;;  %v2782_v31 = vsel %vm505_vm2, %v3579_v12, %v549_v7  ;;  %v567_v38 = vrot.slane %v2758_v1, 1  ;;  %v2799_v7 = vld [vmem:[%s2552_s29 + $0x60] sm:$0xff]  ;;  %v2802_v12 = vld [vmem:[%s2552_s29 + $0x68] sm:$0xff]  ;;  %v529_v40 = vrot.slane %v411_v41, 1 }
  0x36   : > { %v568_v36 = vsel %vm505_vm2, %v566_v30, %v567_v38  ;;  %v527_v30 = vrot.slane %v2802_v12, 1 }
  0x38   : > { %807 = vrot.lane.b32.xlu0 %v740_v61, %s2483_s30  ;;  %598 = vrot.lane.b32.xlu1 %v523_v62, %s2484_s6  ;;  %v700_v61 = vsel %vm682_vm1, %v698_v19, %v699_v28  ;;  %v701_v62 = vrot.slane %v408_v45, 2  ;;  %v570_v19 = vsel %vm505_vm2, %v567_v38, %v569_v63  ;;  %v526_v45 = vrot.slane %v2799_v7, 1 }
  0x39   : > { %v747_v38 = vsel %vm682_vm1, %v744_v60, %v746_v49  ;;  %v704_v63 = vrot.slane %v2802_v12, 2 }
  0x3c   : > { %809 = vrot.lane.b32.xlu0 %v742_v20, %s2483_s30  ;;  %600 = vrot.lane.b32.xlu1 %v525_v33, %s2484_s6  ;;  %v743_v20 = vrot.slane %v2755_v0, 2  ;;  %v702_v33 = vsel %vm682_vm1, %v699_v28, %v701_v62  ;;  %v703_v28 = vrot.slane %v2799_v7, 2  ;;  %v530_v62 = vsel %vm505_vm2, %v527_v30, %v529_v40 }
  0x3e   : > { %v705_v40 = vsel %vm682_vm1, %v703_v28, %v704_v63 }
  0x40   : > { %775 = vrot.lane.b32.xlu0 %v700_v61, %s2483_s30  ;;  %634 = vrot.lane.b32.xlu1 %v568_v36, %s2484_s6  ;;  %v745_v61 = vsel %vm682_vm1, %v743_v20, %v744_v60  ;;  %v528_v36 = vsel %vm505_vm2, %v526_v45, %v527_v30  ;;  %v571_v20 = vrot.slane %v2818_v29, 1  ;;  %v706_v60 = vrot.slane %v411_v41, 2  ;;  %v2847_v45 = vld [vmem:[%s2552_s29 + $0x78] sm:$0xff] }
  0x41   : > { %v748_v41 = vrot.slane %v2818_v29, 2  ;;  %v531_v28 = vrot.slane %v2847_v45, 1 }
  0x42   : > { %v573_v49 = vsel %vm505_vm2, %v571_v20, %v572_v52  ;;  %v707_v52 = vsel %vm682_vm1, %v704_v63, %v706_v60  ;;  %v751_v63 = vrot.slane %v2618_v44, 2  ;;  %v2870_v20 = vld [vmem:[%s2552_s29 + $0x150] sm:$0xff] }
  0x43   : > { %v576_v60 = vrot.slane %v2870_v20, 1 }
  0x44   : > { %777 = vrot.lane.b32.xlu0 %v702_v33, %s2483_s30  ;;  %636 = vrot.lane.b32.xlu1 %v570_v19, %s2484_s6  ;;  %v1518_v33 = vrot.slane %v2836_v32, 1  ;;  %v2844_v19 = vld [vmem:[%s2831_s14 + $0x10] sm:$0x3] }
  0x45   : > { %v1520_v30 = vrot.slane %v2844_v19, 1 }
  0x48   : > { %811 = vrot.lane.b32.xlu0 %v745_v61, %s2483_s30  ;;  %602 = vrot.lane.b32.xlu1 %v528_v36, %s2484_s6  ;;  %v2855_v61 = vsel %vm505_vm2, %v1518_v33, %v1520_v30  ;;  %v749_v36 = vrot.slane %v2615_v43, 2  ;;  %v711_v30 = vrot.slane %v2627_v48, 2 }
  0x4c   : > { %813 = vrot.lane.b32.xlu0 %v747_v38, %s2483_s30  ;;  %604 = vrot.lane.b32.xlu1 %v530_v62, %s2484_s6  ;;  %v750_v38 = vsel %vm682_vm1, %v748_v41, %v749_v36  ;;  %v533_v62 = vsel %vm505_vm2, %v531_v28, %v532_v56  ;;  %v578_v56 = vsel %vm505_vm2, %v576_v60, %v577_v8  ;;  %v3584_v60 = vrot.slane %v2684_v16, 1 }
  0x50   : > { %779 = vrot.lane.b32.xlu0 %v705_v40, %s2483_s30  ;;  %638 = vrot.lane.b32.xlu1 %v573_v49, %s2484_s6  ;;  %v752_v40 = vsel %vm682_vm1, %v749_v36, %v751_v63  ;;  %v708_v49 = vrot.slane %v2847_v45, 2  ;;  %v753_v36 = vrot.slane %v2870_v20, 2 }
  0x54   : > { %781 = vrot.lane.b32.xlu0 %v707_v52, %s2483_s30  ;;  %640 = vrot.lane.b32.xlu1 %v2641_v55, %s2484_s6  ;;  %v709_v55 = vrot.slane %v2624_v47, 2  ;;  %v2887_v52 = vld [vmem:[%s2552_s29 + $0x90] sm:$0xff] }
  0x55   : > { %v536_v28 = vrot.slane %v2887_v52, 1 }
  0x56   : > { %v710_v44 = vsel %vm682_vm1, %v708_v49, %v709_v55  ;;  %v712_v41 = vsel %vm682_vm1, %v709_v55, %v711_v30 }
  0x57   : > { %v538_v8 = vsel %vm505_vm2, %v536_v28, %v537_v14  ;;  %v2923_v14 = vld [vmem:[%s3576_s3 + $0x28] sm:$0x1]  ;;  %v3585_v28 = vrot.slane %v2708_v26, 1 }
  0x58   : > { %815 = vrot.lane.b32.xlu0 %v750_v38, %s2483_s30  ;;  %606 = vrot.lane.b32.xlu1 %v533_v62, %s2484_s6  ;;  %v756_v38 = vrot.slane %v2649_v59, 2  ;;  %v2904_v62 = vld [vmem:[%s2552_s29 + $0x168] sm:$0xff] }
  0x59   : > { %v581_v49 = vrot.slane %v2904_v62, 1  ;;  %v2918_v59 = vld [vmem:[%s3576_s3 + $0x8] sm:$0x1]  ;;  %2374 = vmatprep.subr.msk.mxu0 %vm1051_vm0, %v2923_v14 }
  0x5a   : > { %2322 = vmatprep.subr.msk.mxu1 %vm1051_vm0, %v2918_v59 }
  0x5c   : > { %817 = vrot.lane.b32.xlu0 %v752_v40, %s2483_s30  ;;  %608 = vrot.lane.b32.xlu1 %v2662_v4, %s2484_s6  ;;  %v754_v4 = vrot.slane %v2646_v58, 2  ;;  %v713_v40 = vrot.slane %v2887_v52, 2 }
  0x5e   : > { %v755_v48 = vsel %vm682_vm1, %v753_v36, %v754_v4  ;;  %v757_v63 = vsel %vm682_vm1, %v754_v4, %v756_v38  ;;  %v759_v36 = vrot.slane %v2684_v16, 2 }
  0x60   : > { %783 = vrot.lane.b32.xlu0 %v710_v44, %s2483_s30  ;;  %642 = vrot.lane.b32.xlu1 %v578_v56, %s2484_s6  ;;  %v583_v44 = vsel %vm505_vm2, %v581_v49, %v3584_v60  ;;  %v716_v56 = vrot.slane %v2668_v6, 2  ;;  %v2967_v60 = vld [vmem:[%s2552_s29 + $0xc0] sm:$0xff] }
  0x64   : > { %785 = vrot.lane.b32.xlu0 %v712_v41, %s2483_s30  ;;  %644 = vrot.lane.b32.xlu1 %v2679_v13, %s2484_s6  ;;  %v714_v13 = vrot.slane %v2665_v5, 2  ;;  %v758_v41 = vrot.slane %v2904_v62, 2 }
  0x66   : > { %v715_v55 = vsel %vm682_vm1, %v713_v40, %v714_v13  ;;  %v717_v30 = vsel %vm682_vm1, %v714_v13, %v716_v56  ;;  %v760_v4 = vsel %vm682_vm1, %v758_v41, %v759_v36  ;;  %v719_v40 = vrot.slane %v2708_v26, 2  ;;  %v2958_v13 = vld [vmem:[%s2700_s10] sm:$0xff] }
  0x67   : > { %v939_v56 = vrot.slane %v2958_v13, 2 }
  0x68   : > { %819 = vrot.lane.b32.xlu0 %v755_v48, %s2483_s30  ;;  %610 = vrot.lane.b32.xlu1 %v538_v8, %s2484_s6  ;;  %v761_v8 = vrot.slane %v2687_v17, 2 }
  0x6a   : > { %v762_v38 = vsel %vm682_vm1, %v759_v36, %v761_v8  ;;  %v3587_v36 = vrot.slane %v2744_v50, 1 }
  0x6c   : > { %821 = vrot.lane.b32.xlu0 %v757_v63, %s2483_s30  ;;  %612 = vrot.lane.b32.xlu1 %v2705_v25, %s2484_s6  ;;  %v2935_v25 = vld [vmem:[%s2552_s29 + $0xa8] sm:$0xff] }
  0x6d   : > { %v541_v6 = vrot.slane %v2935_v25, 1  ;;  %v718_v63 = vrot.slane %v2935_v25, 2 }
  0x6f   : > { %v543_v48 = vsel %vm505_vm2, %v541_v6, %v3585_v28  ;;  %v720_v17 = vsel %vm682_vm1, %v718_v63, %v719_v40  ;;  %v723_v63 = vrot.slane %v2967_v60, 2 }
  0x70   : > { %787 = vrot.lane.b32.xlu0 %v715_v55, %s2483_s30  ;;  %646 = vrot.lane.b32.xlu1 %v583_v44, %s2484_s6  ;;  %v928_v55 = vrot.slane %v2958_v13, 1 }
  0x74   : > { %789 = vrot.lane.b32.xlu0 %v717_v30, %s2483_s30  ;;  %648 = vrot.lane.b32.xlu1 %v2729_v39, %s2484_s6  ;;  %v721_v39 = vrot.slane %v2711_v27, 2  ;;  %v3586_v27 = vrot.slane %v2723_v37, 1  ;;  %v546_v30 = vrot.slane %v2967_v60, 1 }
  0x76   : > { %v722_v49 = vsel %vm682_vm1, %v719_v40, %v721_v39  ;;  %v930_v44 = vsel %vm505_vm2, %v928_v55, %v3586_v27  ;;  %v548_v6 = vsel %vm505_vm2, %v546_v30, %v3587_v36  ;;  %v724_v40 = vrot.slane %v2744_v50, 2 }
  0x77   : > { %v726_v55 = vrot.slane %v2747_v53, 2  ;;  %v684_v36 = vrot.slane %v2768_v15, 2 }
  0x78   : > { %823 = vrot.lane.b32.xlu0 %v760_v4, %s2483_s30  ;;  %614 = vrot.lane.b32.xlu1 %v543_v48, %s2484_s6  ;;  %v942_v4 = vrot.slane %v2734_v42, 2 }
  0x7c   : > { %825 = vrot.lane.b32.xlu0 %v762_v38, %s2483_s30  ;;  %616 = vrot.lane.b32.xlu1 %v2740_v46, %s2484_s6  ;;  %v940_v46 = vrot.slane %v2723_v37, 2  ;;  %v2988_v38 = vld [vmem:[%s2552_s29] sm:$0xff]  ;;  %s2167_s29 = sshll.u32 %s3594_s18, 8 }
  0x7d   : > { %v683_v53 = vrot.slane %v2988_v38, 2  ;;  %s3442_s7 = scalar_lea.vmem %s3578_s5, %s2167_s29 }
  0x7e   : > { %v941_v41 = vsel %vm682_vm1, %v939_v56, %v940_v46  ;;  %v943_v42 = vsel %vm682_vm1, %v940_v46, %v942_v4  ;;  %v3588_v46 = vrot.slane %v2768_v15, 1 }
  0x80   : > { %791 = vrot.lane.b32.xlu0 %v720_v17, %s2483_s30  ;;  %793 = vrot.lane.b32.xlu1 %v722_v49, %s2483_s30  ;;  %v506_v17 = vrot.slane %v2988_v38, 1  ;;  %v725_v49 = vsel %vm682_vm1, %v723_v63, %v724_v40 }
  0x82   : > { %v508_v30 = vsel %vm505_vm2, %v506_v17, %v3588_v46  ;;  %v455_v17 = vld [vmem:[%s3576_s3 + $0x20] sm:$0xff] }
  0x84   : > { %933 = vrot.lane.b32.xlu0 %v930_v44, %s2484_s6  ;;  %935 = vrot.lane.b32.xlu1 %v2763_v11, %s2484_s6 }
  0x86   : > { %v800_v28 = vpop.permute.xlu1 %799  ;;  %v623_v48 = vpop.permute.xlu0 %622 }
  0x87   : > { %v878_v8 = vsel %vm859_vm3, %v2555_v2, %v623_v48  ;;  %v686_v48 = vrot.slane %v2771_v18, 2 }
  0x88   : > { %944 = vrot.lane.b32.xlu0 %v941_v41, %s2483_s30  ;;  %618 = vrot.lane.b32.xlu1 %v548_v6, %s2484_s6  ;;  %v2993_v11 = vsel %vm892_vm4, %v878_v8, %v800_v28  ;;  %v3030_v8 = vld [vmem:[%s2831_s14] sm:$0xff] }
  0x89   : > { %2298 = vmatprep.mubr.msk.f32.mxu1 %vm954_vm5, %v2993_v11 }
  0x8a   : > { %v625_v39 = vpop.permute.xlu0 %624  ;;  %v591_v2 = vpop.permute.xlu1 %590 }
  0x8b   : > { %v879_v27 = vsel %vm859_vm3, %v2558_v3, %v625_v39  ;;  %v727_v3 = vsel %vm682_vm1, %v724_v40, %v726_v55  ;;  %v862_v6 = vsel %vm859_vm3, %v2566_v9, %v591_v2  ;;  %v685_v9 = vsel %vm682_vm1, %v683_v53, %v684_v36 }
  0x8c   : > { %946 = vrot.lane.b32.xlu0 %v943_v42, %s2483_s30  ;;  %620 = vrot.lane.b32.xlu1 %v2782_v31, %s2484_s6  ;;  %v451_v31 = vld [vmem:[%s3576_s3] sm:$0xff]  ;;  %v687_v39 = vsel %vm682_vm1, %v684_v36, %v686_v48 }
  0x8e   : > { %v802_v44 = vpop.permute.xlu0 %801  ;;  %v593_v56 = vpop.permute.xlu1 %592 }
  0x8f   : > { %v3012_v41 = vsel %vm892_vm4, %v879_v27, %v802_v44  ;;  %v863_v18 = vsel %vm859_vm3, %v2569_v10, %v593_v56  ;;  %v1531_v56 = vrot.slane %v2844_v19, 2 }
  0x90   : > { %2299 = vmatmul.mubr.msk.f32.vlgmr.msra.gmra.mxu1 %vm954_vm5, %v3012_v41  ;;  %795 = vrot.lane.b32.xlu0 %v725_v49, %s2483_s30  ;;  %v1529_v49 = vrot.slane %v2836_v32, 2 }
  0x91   : > { %586 = vrot.lane.b32.xlu1 %v508_v30, %s2484_s6  ;;  %2323 = vmatpush3.msk.msra.mxu1 %vm1051_vm0, %v2918_v59  ;;  %v1517_v59 = vrot.slane %v3030_v8, 1 }
  0x92   : > { %v768_v4 = vpop.permute.xlu0 %767  ;;  %v627_v28 = vpop.permute.xlu1 %626  ;;  %2324 = vmatprep.subr.mxu1 %v451_v31  ;;  %v1532_v30 = vsel %vm682_vm1, %v1529_v49, %v1531_v56 }
  0x93   : > { %v3033_v42 = vsel %vm892_vm4, %v862_v6, %v768_v4  ;;  %2325 = vmatpush3.msra.mxu1 %v451_v31  ;;  %v1519_v10 = vsel %vm505_vm2, %v1517_v59, %v1518_v33  ;;  %v880_v55 = vsel %vm859_vm3, %v2581_v21, %v627_v28 }
  0x94   : > { %797 = vrot.lane.b32.xlu0 %v727_v3, %s2483_s30  ;;  %2274 = vmatprep.mubr.msk.f32.mxu0 %vm954_vm5, %v3033_v42 }
  0x95   : > { %588 = vrot.lane.b32.xlu1 %v2792_v57, %s2484_s6  ;;  %v1528_v57 = vrot.slane %v3030_v8, 2 }
  0x96   : > { %v770_v63 = vpop.permute.xlu0 %769  ;;  %v629_v40 = vpop.permute.xlu1 %628 }
  0x97   : > { %v3046_v2 = vsel %vm892_vm4, %v863_v18, %v770_v63  ;;  %v1530_v33 = vsel %vm682_vm1, %v1528_v57, %v1529_v49  ;;  %v881_v21 = vsel %vm859_vm3, %v2584_v22, %v629_v40 }
  0x98   : > { %2275 = vmatmul.mubr.msk.f32.vlgmr.msra.gmra.mxu0 %vm954_vm5, %v3046_v2  ;;  %763 = vrot.lane.b32.xlu0 %v685_v9, %s2483_s30 }
  0x99   : > { %765 = vrot.lane.b32.xlu1 %v687_v39, %s2483_s30  ;;  %2375 = vmatpush3.msk.msra.mxu0 %vm1051_vm0, %v2923_v14 }
  0x9a   : > { %v804_v27 = vpop.permute.xlu0 %803  ;;  %v595_v44 = vpop.permute.xlu1 %594  ;;  %2376 = vmatprep.subr.mxu0 %v455_v17 }
  0x9b   : > { %v3066_v46 = vsel %vm892_vm4, %v880_v55, %v804_v27  ;;  %2377 = vmatpush3.msra.mxu0 %v455_v17 }
  0x9c   : > { %2301 = vmatprep.mubr.msk.f32.mxu1 %vm954_vm5, %v3066_v46  ;;  %1522 = vrot.lane.b32.xlu0 %v1519_v10, %s2484_s6 }
  0x9d   : > { %1524 = vrot.lane.b32.xlu1 %v2855_v61, %s2484_s6  ;;  %v864_v61 = vsel %vm859_vm3, %v2600_v34, %v595_v44 }
  0x9e   : > { %v806_v14 = vpop.permute.xlu0 %805  ;;  %v597_v19 = vpop.permute.xlu1 %596 }
  0x9f   : > { %v3078_v31 = vsel %vm892_vm4, %v881_v21, %v806_v14  ;;  %v865_v36 = vsel %vm859_vm3, %v2603_v35, %v597_v19 }
  0xa0   : > { %2302 = vmatmul.mubr.msk.f32.gmra.mxu1 %vm954_vm5, %v3078_v31  ;;  %1533 = vrot.lane.b32.xlu0 %v1530_v33, %s2483_s30 }
  0xa1   : > { %1535 = vrot.lane.b32.xlu1 %v1532_v30, %s2483_s30 }
  0xa2   : > { %v772_v3 = vpop.permute.xlu0 %771  ;;  %v631_v53 = vpop.permute.xlu1 %630 }
  0xa3   : > { %v3087_v22 = vsel %vm892_vm4, %v864_v61, %v772_v3  ;;  %v882_v34 = vsel %vm859_vm3, %v2631_v51, %v631_v53 }
  0xa4   : > { %2277 = vmatprep.mubr.msk.f32.mxu0 %vm954_vm5, %v3087_v22 }
  0xa6   : > { %v774_v6 = vpop.permute.xlu0 %773  ;;  %v633_v4 = vpop.permute.xlu1 %632 }
  0xa7   : > { %v3094_v28 = vsel %vm892_vm4, %v865_v36, %v774_v6  ;;  %v883_v35 = vsel %vm859_vm3, %v2636_v54, %v633_v4 }
  0xa8   : > { %2278 = vmatmul.mubr.msk.f32.gmra.mxu0 %vm954_vm5, %v3094_v28 }
  0xaa   : > { %v808_v48 = vpop.permute.xlu0 %807  ;;  %v599_v9 = vpop.permute.xlu1 %598 }
  0xab   : > { %v3101_v59 = vsel %vm892_vm4, %v882_v34, %v808_v48  ;;  %v866_v51 = vsel %vm859_vm3, %v2692_v23, %v599_v9 }
  0xac   : > { %2304 = vmatprep.mubr.msk.f32.mxu1 %vm954_vm5, %v3101_v59 }
  0xae   : > { %v810_v18 = vpop.permute.xlu0 %809  ;;  %v601_v63 = vpop.permute.xlu1 %600 }
  0xaf   : > { %v3108_v40 = vsel %vm892_vm4, %v883_v35, %v810_v18  ;;  %v867_v54 = vsel %vm859_vm3, %v2695_v24, %v601_v63 }
  0xb0   : > { %2305 = vmatmul.mubr.msk.f32.gmra.mxu1 %vm954_vm5, %v3108_v40 }
  0xb2   : > { %v776_v39 = vpop.permute.xlu0 %775  ;;  %v635_v17 = vpop.permute.xlu1 %634 }
  0xb3   : > { %v3115_v10 = vsel %vm892_vm4, %v866_v51, %v776_v39  ;;  %v884_v23 = vsel %vm859_vm3, %v2755_v0, %v635_v17 }
  0xb4   : > { %2280 = vmatprep.mubr.msk.f32.mxu0 %vm954_vm5, %v3115_v10 }
  0xb6   : > { %v778_v57 = vpop.permute.xlu0 %777  ;;  %v637_v49 = vpop.permute.xlu1 %636 }
  0xb7   : > { %v3122_v55 = vsel %vm892_vm4, %v867_v54, %v778_v57  ;;  %v885_v24 = vsel %vm859_vm3, %v2758_v1, %v637_v49 }
  0xb8   : > { %2281 = vmatmul.mubr.msk.f32.gmra.mxu0 %vm954_vm5, %v3122_v55 }
  0xba   : > { %v812_v27 = vpop.permute.xlu0 %811  ;;  %v603_v44 = vpop.permute.xlu1 %602 }
  0xbb   : > { %v3129_v56 = vsel %vm892_vm4, %v884_v23, %v812_v27  ;;  %v868_v0 = vsel %vm859_vm3, %v2799_v7, %v603_v44 }
  0xbc   : > { %2307 = vmatprep.mubr.msk.f32.mxu1 %vm954_vm5, %v3129_v56 }
  0xbe   : > { %v814_v33 = vpop.permute.xlu0 %813  ;;  %v605_v21 = vpop.permute.xlu1 %604 }
  0xbf   : > { %v3136_v14 = vsel %vm892_vm4, %v885_v24, %v814_v33  ;;  %v869_v1 = vsel %vm859_vm3, %v2802_v12, %v605_v21 }
  0xc0   : > { %2308 = vmatmul.mubr.msk.f32.gmra.mxu1 %vm954_vm5, %v3136_v14 }
  0xc2   : > { %v780_v19 = vpop.permute.xlu0 %779  ;;  %v639_v30 = vpop.permute.xlu1 %638 }
  0xc3   : > { %v3143_v61 = vsel %vm892_vm4, %v868_v0, %v780_v19  ;;  %v886_v7 = vsel %vm859_vm3, %v2818_v29, %v639_v30 }
  0xc4   : > { %2283 = vmatprep.mubr.msk.f32.mxu0 %vm954_vm5, %v3143_v61 }
  0xc6   : > { %v782_v3 = vpop.permute.xlu0 %781  ;;  %v641_v53 = vpop.permute.xlu1 %640 }
  0xc7   : > { %v3150_v36 = vsel %vm892_vm4, %v869_v1, %v782_v3  ;;  %v887_v12 = vsel %vm859_vm3, %v2615_v43, %v641_v53 }
  0xc8   : > { %2284 = vmatmul.mubr.msk.f32.gmra.mxu0 %vm954_vm5, %v3150_v36 }
  0xca   : > { %v816_v6 = vpop.permute.xlu0 %815  ;;  %v607_v4 = vpop.permute.xlu1 %606 }
  0xcb   : > { %v3157_v34 = vsel %vm892_vm4, %v886_v7, %v816_v6  ;;  %v870_v29 = vsel %vm859_vm3, %v2847_v45, %v607_v4 }
  0xcc   : > { %2310 = vmatprep.mubr.msk.f32.mxu1 %vm954_vm5, %v3157_v34 }
  0xce   : > { %v818_v48 = vpop.permute.xlu0 %817  ;;  %v609_v9 = vpop.permute.xlu1 %608 }
  0xcf   : > { %v3164_v35 = vsel %vm892_vm4, %v887_v12, %v818_v48  ;;  %v871_v43 = vsel %vm859_vm3, %v2624_v47, %v609_v9 }
  0xd0   : > { %2311 = vmatmul.mubr.msk.f32.gmra.mxu1 %vm954_vm5, %v3164_v35 }
  0xd2   : > { %v784_v18 = vpop.permute.xlu0 %783  ;;  %v643_v63 = vpop.permute.xlu1 %642 }
  0xd3   : > { %v3171_v51 = vsel %vm892_vm4, %v870_v29, %v784_v18  ;;  %v888_v45 = vsel %vm859_vm3, %v2870_v20, %v643_v63 }
  0xd4   : > { %2286 = vmatprep.mubr.msk.f32.mxu0 %vm954_vm5, %v3171_v51 }
  0xd6   : > { %v786_v39 = vpop.permute.xlu0 %785  ;;  %v645_v17 = vpop.permute.xlu1 %644 }
  0xd7   : > { %v3178_v54 = vsel %vm892_vm4, %v871_v43, %v786_v39  ;;  %v889_v47 = vsel %vm859_vm3, %v2646_v58, %v645_v17 }
  0xd8   : > { %2287 = vmatmul.mubr.msk.f32.gmra.mxu0 %vm954_vm5, %v3178_v54 }
  0xda   : > { %v820_v57 = vpop.permute.xlu0 %819  ;;  %v611_v49 = vpop.permute.xlu1 %610 }
  0xdb   : > { %v3185_v23 = vsel %vm892_vm4, %v888_v45, %v820_v57  ;;  %v872_v20 = vsel %vm859_vm3, %v2887_v52, %v611_v49 }
  0xdc   : > { %2313 = vmatprep.mubr.msk.f32.mxu1 %vm954_vm5, %v3185_v23 }
  0xde   : > { %v822_v27 = vpop.permute.xlu0 %821  ;;  %v613_v44 = vpop.permute.xlu1 %612 }
  0xdf   : > { %v3192_v24 = vsel %vm892_vm4, %v889_v47, %v822_v27  ;;  %v873_v58 = vsel %vm859_vm3, %v2665_v5, %v613_v44 }
  0xe0   : > { %2314 = vmatmul.mubr.msk.f32.gmra.mxu1 %vm954_vm5, %v3192_v24 }
  0xe2   : > { %v788_v33 = vpop.permute.xlu0 %787  ;;  %v647_v21 = vpop.permute.xlu1 %646 }
  0xe3   : > { %v3199_v0 = vsel %vm892_vm4, %v872_v20, %v788_v33  ;;  %v890_v52 = vsel %vm859_vm3, %v2904_v62, %v647_v21 }
  0xe4   : > { %2289 = vmatprep.mubr.msk.f32.mxu0 %vm954_vm5, %v3199_v0 }
  0xe6   : > { %v790_v19 = vpop.permute.xlu0 %789  ;;  %v649_v30 = vpop.permute.xlu1 %648 }
  0xe7   : > { %v3206_v1 = vsel %vm892_vm4, %v873_v58, %v790_v19  ;;  %v891_v5 = vsel %vm859_vm3, %v2684_v16, %v649_v30 }
  0xe8   : > { %2290 = vmatmul.mubr.msk.f32.gmra.mxu0 %vm954_vm5, %v3206_v1 }
  0xea   : > { %v824_v3 = vpop.permute.xlu0 %823  ;;  %v615_v53 = vpop.permute.xlu1 %614 }
  0xeb   : > { %v3213_v7 = vsel %vm892_vm4, %v890_v52, %v824_v3  ;;  %v874_v62 = vsel %vm859_vm3, %v2935_v25, %v615_v53 }
  0xec   : > { %2316 = vmatprep.mubr.msk.f32.mxu1 %vm954_vm5, %v3213_v7 }
  0xee   : > { %v826_v6 = vpop.permute.xlu0 %825  ;;  %v617_v4 = vpop.permute.xlu1 %616 }
  0xef   : > { %v3220_v12 = vsel %vm892_vm4, %v891_v5, %v826_v6  ;;  %v875_v48 = vsel %vm859_vm3, %v2708_v26, %v617_v4 }
  0xf0   : > { %2317 = vmatmul.mubr.msk.f32.gmra.mxu1 %vm954_vm5, %v3220_v12 }
  0xf2   : > { %v792_v9 = vpop.permute.xlu0 %791  ;;  %v794_v29 = vpop.permute.xlu1 %793 }
  0xf3   : > { %v907_v18 = vsel %vm892_vm4, %v874_v62, %v792_v9  ;;  %v908_v16 = vsel %vm892_vm4, %v875_v48, %v794_v29 }
  0xf4   : > { %2292 = vmatprep.mubr.msk.f32.mxu0 %vm954_vm5, %v907_v18 }
  0xf5   : > { %2293 = vmatmul.mubr.msk.f32.gmra.mxu0 %vm954_vm5, %v908_v16 }
  0xf6   : > { %v934_v63 = vpop.permute.xlu0 %933  ;;  %v936_v43 = vpop.permute.xlu1 %935 }
  0xf7   : > { %v950_v39 = vsel %vm859_vm3, %v2958_v13, %v934_v63  ;;  %v951_v26 = vsel %vm859_vm3, %v2723_v37, %v936_v43 }
  0xfa   : > { %v945_v17 = vpop.permute.xlu0 %944  ;;  %v619_v25 = vpop.permute.xlu1 %618 }
  0xfb   : > { %v3235_v45 = vsel %vm892_vm4, %v950_v39, %v945_v17  ;;  %v876_v13 = vsel %vm859_vm3, %v2967_v60, %v619_v25  ;;  %v3435_v25 = vld [vmem:[%s3577_s4] ss:$0 sm:$0xff] }
  0xfc   : > { %2319 = vmatprep.mubr.msk.f32.mxu1 %vm954_vm5, %v3235_v45 }
  0xfe   : > { %v947_v57 = vpop.permute.xlu0 %946  ;;  %v621_v49 = vpop.permute.xlu1 %620 }
  0xff   : > { %v3242_v47 = vsel %vm892_vm4, %v951_v26, %v947_v57  ;;  %v877_v37 = vsel %vm859_vm3, %v2744_v50, %v621_v49 }
 0x100   : > { %2320 = vmatmul.mubr.msk.f32.gmra.mxu1 %vm954_vm5, %v3242_v47 }
 0x102   : > { %v796_v27 = vpop.permute.xlu0 %795 }
 0x103   : > { %v909_v44 = vsel %vm892_vm4, %v876_v13, %v796_v27  ;;  %v587_v20 = vpop.permute.xlu1 %586 }
 0x104   : > { %2295 = vmatprep.mubr.msk.f32.mxu0 %vm954_vm5, %v909_v44  ;;  %v860_v60 = vsel %vm859_vm3, %v2988_v38, %v587_v20 }
 0x106   : > { %v798_v33 = vpop.permute.xlu0 %797 }
 0x107   : > { %v910_v21 = vsel %vm892_vm4, %v877_v37, %v798_v33  ;;  %v589_v58 = vpop.permute.xlu1 %588 }
 0x108   : > { %2296 = vmatmul.mubr.msk.f32.gmra.mxu0 %vm954_vm5, %v910_v21  ;;  %v861_v30 = vsel %vm859_vm3, %v2768_v15, %v589_v58 }
 0x109   : > { %2378 = vmatprep.mubr.msk.f32.mxu0 %vm954_vm5, %v3087_v22 }
 0x10a   : > { %v764_v19 = vpop.permute.xlu0 %763 }
 0x10b   : > { %v893_v52 = vsel %vm892_vm4, %v860_v60, %v764_v19  ;;  %v766_v3 = vpop.permute.xlu1 %765 }
 0x10c   : > { %v894_v50 = vsel %vm892_vm4, %v861_v30, %v766_v3  ;;  %2326 = vmatprep.mubr.msk.f32.mxu1 %vm954_vm5, %v893_v52  ;;  %2379 = vmatmul.mubr.msk.f32.vlgmr.msra.gmra.mxu0 %vm954_vm5, %v3094_v28 }
 0x10d   : > { %2327 = vmatmul.mubr.msk.f32.vlgmr.msra.gmra.mxu1 %vm954_vm5, %v894_v50  ;;  %2381 = vmatprep.mubr.msk.f32.mxu0 %vm954_vm5, %v3115_v10 }
 0x10e   : > { %2329 = vmatprep.mubr.msk.f32.mxu1 %vm954_vm5, %v3033_v42  ;;  %v1523_v15 = vpop.permute.xlu0 %1522 }
 0x10f   : > { %v1525_v38 = vpop.permute.xlu1 %1524 }
 0x110   : > { %2382 = vmatmul.mubr.msk.f32.gmra.mxu0 %vm954_vm5, %v3122_v55  ;;  %v1540_v42 = vsel %vm859_vm3, %v2836_v32, %v1525_v38 }
 0x111   : > { %2330 = vmatmul.mubr.msk.f32.gmra.mxu1 %vm954_vm5, %v3046_v2  ;;  %2384 = vmatprep.mubr.msk.f32.mxu0 %vm954_vm5, %v3143_v61 }
 0x112   : > { %2332 = vmatprep.mubr.msk.f32.mxu1 %vm954_vm5, %v3087_v22 }
 0x114   : > { %2385 = vmatmul.mubr.msk.f32.gmra.mxu0 %vm954_vm5, %v3150_v36 }
 0x115   : > { %2333 = vmatmul.mubr.msk.f32.gmra.mxu1 %vm954_vm5, %v3094_v28  ;;  %2387 = vmatprep.mubr.msk.f32.mxu0 %vm954_vm5, %v3171_v51 }
 0x116   : > { %2335 = vmatprep.mubr.msk.f32.mxu1 %vm954_vm5, %v3115_v10 }
 0x118   : > { %2388 = vmatmul.mubr.msk.f32.gmra.mxu0 %vm954_vm5, %v3178_v54 }
 0x119   : > { %2336 = vmatmul.mubr.msk.f32.gmra.mxu1 %vm954_vm5, %v3122_v55  ;;  %2390 = vmatprep.mubr.msk.f32.mxu0 %vm954_vm5, %v3199_v0 }
 0x11a   : > { %2338 = vmatprep.mubr.msk.f32.mxu1 %vm954_vm5, %v3143_v61 }
 0x11c   : > { %2391 = vmatmul.mubr.msk.f32.gmra.mxu0 %vm954_vm5, %v3206_v1 }
 0x11d   : > { %2339 = vmatmul.mubr.msk.f32.gmra.mxu1 %vm954_vm5, %v3150_v36  ;;  %2393 = vmatprep.mubr.msk.f32.mxu0 %vm954_vm5, %v907_v18 }
 0x11e   : > { %2341 = vmatprep.mubr.msk.f32.mxu1 %vm954_vm5, %v3171_v51 }
 0x120   : > { %2394 = vmatmul.mubr.msk.f32.gmra.mxu0 %vm954_vm5, %v908_v16 }
 0x121   : > { %2342 = vmatmul.mubr.msk.f32.gmra.mxu1 %vm954_vm5, %v3178_v54  ;;  %2396 = vmatprep.mubr.msk.f32.mxu0 %vm954_vm5, %v909_v44 }
 0x122   : > { %2344 = vmatprep.mubr.msk.f32.mxu1 %vm954_vm5, %v3199_v0 }
 0x124   : > { %2397 = vmatmul.mubr.msk.f32.gmra.mxu0 %vm954_vm5, %v910_v21 }
 0x125   : > { %2345 = vmatmul.mubr.msk.f32.gmra.mxu1 %vm954_vm5, %v3206_v1  ;;  %2399 = vmatprep.mubr.msk.f32.mxu0 %vm954_vm5, %v2993_v11 }
 0x126   : > { %2347 = vmatprep.mubr.msk.f32.mxu1 %vm954_vm5, %v907_v18 }
 0x128   : > { %2400 = vmatmul.mubr.msk.f32.gmra.mxu0 %vm954_vm5, %v3012_v41 }
 0x129   : > { %2348 = vmatmul.mubr.msk.f32.gmra.mxu1 %vm954_vm5, %v908_v16  ;;  %2402 = vmatprep.mubr.msk.f32.mxu0 %vm954_vm5, %v3066_v46 }
 0x12a   : > { %2350 = vmatprep.mubr.msk.f32.mxu1 %vm954_vm5, %v909_v44 }
 0x12c   : > { %2403 = vmatmul.mubr.msk.f32.gmra.mxu0 %vm954_vm5, %v3078_v31 }
 0x12d   : > { %2351 = vmatmul.mubr.msk.f32.gmra.mxu1 %vm954_vm5, %v910_v21  ;;  %2405 = vmatprep.mubr.msk.f32.mxu0 %vm954_vm5, %v3101_v59 }
 0x12e   : > { %2353 = vmatprep.mubr.msk.f32.mxu1 %vm954_vm5, %v2993_v11  ;;  %v1539_v11 = vsel %vm859_vm3, %v3030_v8, %v1523_v15 }
 0x130   : > { %2406 = vmatmul.mubr.msk.f32.gmra.mxu0 %vm954_vm5, %v3108_v40 }
 0x131   : > { %2354 = vmatmul.mubr.msk.f32.gmra.mxu1 %vm954_vm5, %v3012_v41  ;;  %2408 = vmatprep.mubr.msk.f32.mxu0 %vm954_vm5, %v3129_v56  ;;  %v1534_v41 = vpop.permute.xlu0 %1533 }
 0x132   : > { %2356 = vmatprep.mubr.msk.f32.mxu1 %vm954_vm5, %v3066_v46  ;;  %v1541_v2 = vsel %vm892_vm4, %v1539_v11, %v1534_v41  ;;  %v1536_v46 = vpop.permute.xlu1 %1535 }
 0x133   : > { %v1542_v8 = vsel %vm892_vm4, %v1540_v42, %v1536_v46 }
 0x134   : > { %2409 = vmatmul.mubr.msk.f32.gmra.mxu0 %vm954_vm5, %v3136_v14 }
 0x135   : > { %2357 = vmatmul.mubr.msk.f32.gmra.mxu1 %vm954_vm5, %v3078_v31  ;;  %2411 = vmatprep.mubr.msk.f32.mxu0 %vm954_vm5, %v3157_v34 }
 0x136   : > { %2359 = vmatprep.mubr.msk.f32.mxu1 %vm954_vm5, %v3101_v59 }
 0x138   : > { %2412 = vmatmul.mubr.msk.f32.gmra.mxu0 %vm954_vm5, %v3164_v35 }
 0x139   : > { %2360 = vmatmul.mubr.msk.f32.gmra.mxu1 %vm954_vm5, %v3108_v40  ;;  %2414 = vmatprep.mubr.msk.f32.mxu0 %vm954_vm5, %v3185_v23 }
 0x13a   : > { %2362 = vmatprep.mubr.msk.f32.mxu1 %vm954_vm5, %v3129_v56 }
 0x13c   : > { %2415 = vmatmul.mubr.msk.f32.gmra.mxu0 %vm954_vm5, %v3192_v24 }
 0x13d   : > { %2363 = vmatmul.mubr.msk.f32.gmra.mxu1 %vm954_vm5, %v3136_v14  ;;  %2417 = vmatprep.mubr.msk.f32.mxu0 %vm954_vm5, %v3213_v7 }
 0x13e   : > { %2365 = vmatprep.mubr.msk.f32.mxu1 %vm954_vm5, %v3157_v34 }
 0x140   : > { %2418 = vmatmul.mubr.msk.f32.gmra.mxu0 %vm954_vm5, %v3220_v12 }
 0x141   : > { %2420 = vmatprep.mubr.msk.f32.mxu0 %vm954_vm5, %v3235_v45  ;;  %2366 = vmatmul.mubr.msk.f32.gmra.mxu1 %vm954_vm5, %v3164_v35 }
 0x142   : > { %2368 = vmatprep.mubr.msk.f32.mxu1 %vm954_vm5, %v3185_v23 }
 0x144   : > { %2421 = vmatmul.mubr.msk.f32.gmra.mxu0 %vm954_vm5, %v3242_v47 }
 0x145   : > { %2369 = vmatmul.mubr.msk.f32.gmra.mxu1 %vm954_vm5, %v3192_v24  ;;  %2423 = vmatprep.mubr.msk.f32.mxu0 %vm954_vm5, %v1541_v2 }
 0x146   : > { %2371 = vmatprep.mubr.msk.f32.mxu1 %vm954_vm5, %v3213_v7 }
 0x148   : > { %2424 = vmatmul.mubr.msk.f32.gmra.mxu0 %vm954_vm5, %v1542_v8 }
 0x149   : > { %2372 = vmatmul.mubr.msk.f32.gmra.mxu1 %vm954_vm5, %v3220_v12 }
 0x150   : > { %v3382_v32 = vpop.f32.mrf.mxu1 }
 0x152   : > { %v3384_v22 = vpop.f32.mrf.mxu1 }
 0x158   : > { %v2276_v31 = vpop.f32.mrf.mxu0 }
 0x15a   : > { %v1121_v28 = vpop.f32.mrf.mxu0 }
 0x160   : > { %v3386_v59 = vpop.f32.mrf.mxu1 }
 0x162   : > { %v3388_v10 = vpop.f32.mrf.mxu1 }
 0x168   : > { %v2279_v40 = vpop.f32.mrf.mxu0 }
 0x16a   : > { %v1131_v55 = vpop.f32.mrf.mxu0 }
 0x170   : > { %v3390_v56 = vpop.f32.mrf.mxu1 }
 0x172   : > { %v3392_v61 = vpop.f32.mrf.mxu1 }
 0x178   : > { %v2282_v14 = vpop.f32.mrf.mxu0 }
 0x17a   : > { %v1141_v36 = vpop.f32.mrf.mxu0 }
 0x180   : > { %v3394_v34 = vpop.f32.mrf.mxu1 }
 0x182   : > { %v3396_v51 = vpop.f32.mrf.mxu1 }
 0x188   : > { %v2285_v35 = vpop.f32.mrf.mxu0 }
 0x18a   : > { %v3398_v54 = vpop.f32.mrf.mxu0 }
 0x190   : > { %v3400_v23 = vpop.f32.mrf.mxu1 }
 0x192   : > { %v3404_v0 = vpop.f32.mrf.mxu1 }
 0x198   : > { %v3402_v24 = vpop.f32.mrf.mxu0 }
 0x19a   : > { %v3406_v1 = vpop.f32.mrf.mxu0 }
 0x1a0   : > { %v3408_v53 = vpop.f32.mrf.mxu1 }
 0x1a2   : > { %v3412_v5 = vpop.f32.mrf.mxu1 }
 0x1a8   : > { %v3410_v7 = vpop.f32.mrf.mxu0 }
 0x1aa   : > { %v3414_v6 = vpop.f32.mrf.mxu0 }
 0x1b0   : > { %v3416_v4 = vpop.f32.mrf.mxu1 }
 0x1b2   : > { %v3420_v62 = vpop.f32.mrf.mxu1 }
 0x1b5   : > { %v3418_v12 = vpop.f32.mrf.mxu0 }
 0x1b7   : > { %v3422_v48 = vpop.f32.mrf.mxu0 }
 0x1c0   : > { %v3424_v9 = vpop.f32.mrf.mxu1 }
 0x1c2   : > { %v3430_v16 = vpop.f32.mrf.mxu1 }
 0x1c8   : > { %v3426_v29 = vpop.f32.mrf.mxu0 }
 0x1ca   : > { %v3428_v18 = vpop.f32.mrf.mxu0 }
 0x1cc   : > { %v2380_v63 = vpop.f32.mrf.mxu0 }
 0x1cd   : > { %v2328_v43 = vpop.f32.mrf.mxu1 }
 0x1ce   : > { %v1361_v39 = vadd.f32 %v2328_v43, %v2276_v31  ;;  %v1618_v17 = vpop.f32.mrf.mxu0 }
 0x1cf   : > { %v1355_v45 = vpop.f32.mrf.mxu1 }
 0x1d0   : > { %v1778_v26 = vadd.f32 %v2380_v63, %v1361_v39  ;;  %v1356_v57 = vadd.f32 %v1355_v45, %v1121_v28  ;;  %v2383_v49 = vpop.f32.mrf.mxu0 }
 0x1d1   : > { %v2331_v47 = vpop.f32.mrf.mxu1 }
 0x1d2   : > { %v1817_v13 = vadd.f32 %v3435_v25, %v1778_v26  ;;  %v1777_v27 = vadd.f32 %v1618_v17, %v1356_v57  ;;  %v1371_v44 = vadd.f32 %v2331_v47, %v2279_v40  ;;  %v1628_v20 = vpop.f32.mrf.mxu0 }
 0x1d3   : > { %v1365_v37 = vpop.f32.mrf.mxu1 }
 0x1d4   : > { %v1849_v33 = vmax.f32 %v1817_v13, 0.0  ;;  %v1816_v21 = vadd.f32 %v3435_v25, %v1777_v27  ;;  %v1780_v58 = vadd.f32 %v2383_v49, %v1371_v44  ;;  %v1366_v60 = vadd.f32 %v1365_v37, %v1131_v55  ;;  %v2386_v19 = vpop.f32.mrf.mxu0 }
 0x1d5   : > { %v2334_v30 = vpop.f32.mrf.mxu1 }
 0x1d6   : > { %1882 = vst.msk [vmem:[%s3442_s7 + $0x8] sm:$0xff] %vm1880_vm6, %v1849_v33  ;;  %v1848_v52 = vmax.f32 %v1816_v21, 0.0  ;;  %v1819_v3 = vadd.f32 %v3435_v25, %v1780_v58  ;;  %v1779_v50 = vadd.f32 %v1628_v20, %v1366_v60  ;;  %v1381_v15 = vadd.f32 %v2334_v30, %v2282_v14  ;;  %v1638_v38 = vpop.f32.mrf.mxu0 }
 0x1d7   : > { %v1375_v11 = vpop.f32.mrf.mxu1 }
 0x1d8   : > { %1881 = vst.msk [vmem:[%s3442_s7] sm:$0xff] %vm1880_vm6, %v1848_v52  ;;  %v1851_v41 = vmax.f32 %v1819_v3, 0.0  ;;  %v1818_v42 = vadd.f32 %v3435_v25, %v1779_v50  ;;  %v1782_v2 = vadd.f32 %v2386_v19, %v1381_v15  ;;  %v1376_v46 = vadd.f32 %v1375_v11, %v1141_v36  ;;  %v2389_v8 = vpop.f32.mrf.mxu0 }
 0x1d9   : > { %v2337_v31 = vpop.f32.mrf.mxu1 }
 0x1da   : > { %1884 = vst.msk [vmem:[%s3442_s7 + $0x18] sm:$0xff] %vm1880_vm6, %v1851_v41  ;;  %v1850_v28 = vmax.f32 %v1818_v42, 0.0  ;;  %v1821_v40 = vadd.f32 %v3435_v25, %v1782_v2  ;;  %v1781_v55 = vadd.f32 %v1638_v38, %v1376_v46  ;;  %v1391_v14 = vadd.f32 %v2337_v31, %v2285_v35  ;;  %v1648_v63 = vpop.f32.mrf.mxu0 }
 0x1db   : > { %v1385_v43 = vpop.f32.mrf.mxu1 }
 0x1dc   : > { %1883 = vst.msk [vmem:[%s3442_s7 + $0x10] sm:$0xff] %vm1880_vm6, %v1850_v28  ;;  %v1853_v39 = vmax.f32 %v1821_v40, 0.0  ;;  %v1820_v17 = vadd.f32 %v3435_v25, %v1781_v55  ;;  %v1784_v45 = vadd.f32 %v2389_v8, %v1391_v14  ;;  %v1386_v36 = vadd.f32 %v1385_v43, %v3398_v54  ;;  %v2392_v26 = vpop.f32.mrf.mxu0 }
 0x1dd   : > { %v2340_v57 = vpop.f32.mrf.mxu1 }
 0x1de   : > { %1886 = vst.msk [vmem:[%s3442_s7 + $0x28] sm:$0xff] %vm1880_vm6, %v1853_v39  ;;  %v1852_v49 = vmax.f32 %v1820_v17, 0.0  ;;  %v1823_v47 = vadd.f32 %v3435_v25, %v1784_v45  ;;  %v1783_v35 = vadd.f32 %v1648_v63, %v1386_v36  ;;  %v1401_v13 = vadd.f32 %v2340_v57, %v3402_v24  ;;  %v1658_v27 = vpop.f32.mrf.mxu0 }
 0x1df   : > { %v1395_v44 = vpop.f32.mrf.mxu1 }
 0x1e0   : > { %1885 = vst.msk [vmem:[%s3442_s7 + $0x20] sm:$0xff] %vm1880_vm6, %v1852_v49  ;;  %v1855_v20 = vmax.f32 %v1823_v47, 0.0  ;;  %v1822_v37 = vadd.f32 %v3435_v25, %v1783_v35  ;;  %v1786_v54 = vadd.f32 %v2392_v26, %v1401_v13  ;;  %v1396_v33 = vadd.f32 %v1395_v44, %v3406_v1  ;;  %v2395_v21 = vpop.f32.mrf.mxu0 }
 0x1e1   : > { %v2343_v58 = vpop.f32.mrf.mxu1 }
 0x1e2   : > { %1888 = vst.msk [vmem:[%s3442_s7 + $0x38] sm:$0xff] %vm1880_vm6, %v1855_v20  ;;  %v1854_v60 = vmax.f32 %v1822_v37, 0.0  ;;  %v1825_v19 = vadd.f32 %v3435_v25, %v1786_v54  ;;  %v1785_v24 = vadd.f32 %v1658_v27, %v1396_v33  ;;  %v1411_v30 = vadd.f32 %v2343_v58, %v3410_v7  ;;  %v1668_v52 = vpop.f32.mrf.mxu0 }
 0x1e3   : > { %v1405_v3 = vpop.f32.mrf.mxu1 }
 0x1e4   : > { %1887 = vst.msk [vmem:[%s3442_s7 + $0x30] sm:$0xff] %vm1880_vm6, %v1854_v60  ;;  %v1857_v50 = vmax.f32 %v1825_v19, 0.0  ;;  %v1824_v15 = vadd.f32 %v3435_v25, %v1785_v24  ;;  %v1788_v1 = vadd.f32 %v2395_v21, %v1411_v30  ;;  %v1406_v38 = vadd.f32 %v1405_v3, %v3414_v6  ;;  %v2398_v11 = vpop.f32.mrf.mxu0 }
 0x1e5   : > { %v2346_v41 = vpop.f32.mrf.mxu1 }
 0x1e6   : > { %1890 = vst.msk [vmem:[%s3442_s7 + $0x48] sm:$0xff] %vm1880_vm6, %v1857_v50  ;;  %v1856_v42 = vmax.f32 %v1824_v15, 0.0  ;;  %v1827_v2 = vadd.f32 %v3435_v25, %v1788_v1  ;;  %v1787_v7 = vadd.f32 %v1668_v52, %v1406_v38  ;;  %v1421_v46 = vadd.f32 %v2346_v41, %v3418_v12  ;;  %v1678_v8 = vpop.f32.mrf.mxu0 }
 0x1e7   : > { %v1415_v31 = vpop.f32.mrf.mxu1 }
 0x1e8   : > { %1889 = vst.msk [vmem:[%s3442_s7 + $0x40] sm:$0xff] %vm1880_vm6, %v1856_v42  ;;  %v1859_v28 = vmax.f32 %v1827_v2, 0.0  ;;  %v1826_v40 = vadd.f32 %v3435_v25, %v1787_v7  ;;  %v1790_v6 = vadd.f32 %v2398_v11, %v1421_v46  ;;  %v1416_v55 = vadd.f32 %v1415_v31, %v3422_v48  ;;  %v2401_v14 = vpop.f32.mrf.mxu0 }
 0x1e9   : > { %v2349_v63 = vpop.f32.mrf.mxu1 }
 0x1ea   : > { %1892 = vst.msk [vmem:[%s3442_s7 + $0x58] sm:$0xff] %vm1880_vm6, %v1859_v28  ;;  %v1858_v43 = vmax.f32 %v1826_v40, 0.0  ;;  %v1829_v39 = vadd.f32 %v3435_v25, %v1790_v6  ;;  %v1789_v12 = vadd.f32 %v1678_v8, %v1416_v55  ;;  %v1431_v17 = vadd.f32 %v2349_v63, %v3426_v29  ;;  %v1688_v45 = vpop.f32.mrf.mxu0 }
 0x1eb   : > { %v1425_v36 = vpop.f32.mrf.mxu1 }
 0x1ec   : > { %1891 = vst.msk [vmem:[%s3442_s7 + $0x50] sm:$0xff] %vm1880_vm6, %v1858_v43  ;;  %v1861_v26 = vmax.f32 %v1829_v39, 0.0  ;;  %v1828_v57 = vadd.f32 %v3435_v25, %v1789_v12  ;;  %v1792_v48 = vadd.f32 %v2401_v14, %v1431_v17  ;;  %v1426_v49 = vadd.f32 %v1425_v36, %v3428_v18  ;;  %v2404_v47 = vpop.f32.mrf.mxu0 }
 0x1ed   : > { %v2352_v35 = vpop.f32.mrf.mxu1 }
 0x1ee   : > { %1894 = vst.msk [vmem:[%s3442_s7 + $0x68] sm:$0xff] %vm1880_vm6, %v1861_v26  ;;  %v1860_v13 = vmax.f32 %v1828_v57, 0.0  ;;  %v1831_v27 = vadd.f32 %v3435_v25, %v1792_v48  ;;  %v1791_v29 = vadd.f32 %v1688_v45, %v1426_v49  ;;  %v1441_v44 = vadd.f32 %v2352_v35, %v3382_v32  ;;  %v1698_v20 = vpop.f32.mrf.mxu0 }
 0x1ef   : > { %v1435_v37 = vpop.f32.mrf.mxu1 }
 0x1f0   : > { %1893 = vst.msk [vmem:[%s3442_s7 + $0x60] sm:$0xff] %vm1880_vm6, %v1860_v13  ;;  %v1863_v54 = vmax.f32 %v1831_v27, 0.0  ;;  %v1830_v33 = vadd.f32 %v3435_v25, %v1791_v29  ;;  %v1794_v18 = vadd.f32 %v2404_v47, %v1441_v44  ;;  %v1436_v21 = vadd.f32 %v1435_v37, %v3384_v22  ;;  %v2407_v58 = vpop.f32.mrf.mxu0 }
 0x1f1   : > { %v2355_v60 = vpop.f32.mrf.mxu1 }
 0x1f2   : > { %1896 = vst.msk [vmem:[%s3442_s7 + $0x78] sm:$0xff] %vm1880_vm6, %v1863_v54  ;;  %v1862_v19 = vmax.f32 %v1830_v33, 0.0  ;;  %v1833_v24 = vadd.f32 %v3435_v25, %v1794_v18  ;;  %v1793_v32 = vadd.f32 %v1698_v20, %v1436_v21  ;;  %v1451_v30 = vadd.f32 %v2355_v60, %v3386_v59  ;;  %v1708_v52 = vpop.f32.mrf.mxu0 }
 0x1f3   : > { %v1445_v3 = vpop.f32.mrf.mxu1 }
 0x1f4   : > { %1895 = vst.msk [vmem:[%s3442_s7 + $0x70] sm:$0xff] %vm1880_vm6, %v1862_v19  ;;  %v1865_v50 = vmax.f32 %v1833_v24, 0.0  ;;  %v1832_v15 = vadd.f32 %v3435_v25, %v1793_v32  ;;  %v1796_v22 = vadd.f32 %v2407_v58, %v1451_v30  ;;  %v1446_v1 = vadd.f32 %v1445_v3, %v3388_v10  ;;  %v2410_v38 = vpop.f32.mrf.mxu0 }
 0x1f5   : > { %v2358_v11 = vpop.f32.mrf.mxu1 }
 0x1f6   : > { %1898 = vst.msk [vmem:[%s3442_s7 + $0x88] sm:$0xff] %vm1880_vm6, %v1865_v50  ;;  %v1864_v41 = vmax.f32 %v1832_v15, 0.0  ;;  %v1835_v42 = vadd.f32 %v3435_v25, %v1796_v22  ;;  %v1795_v59 = vadd.f32 %v1708_v52, %v1446_v1  ;;  %v1461_v2 = vadd.f32 %v2358_v11, %v3390_v56  ;;  %v1718_v7 = vpop.f32.mrf.mxu0 }
 0x1f7   : > { %v1455_v46 = vpop.f32.mrf.mxu1 }
 0x1f8   : > { %1897 = vst.msk [vmem:[%s3442_s7 + $0x80] sm:$0xff] %vm1880_vm6, %v1864_v41  ;;  %v1867_v8 = vmax.f32 %v1835_v42, 0.0  ;;  %v1834_v31 = vadd.f32 %v3435_v25, %v1795_v59  ;;  %v1798_v10 = vadd.f32 %v2410_v38, %v1461_v2  ;;  %v1456_v28 = vadd.f32 %v1455_v46, %v3392_v61  ;;  %v2413_v40 = vpop.f32.mrf.mxu0 }
 0x1f9   : > { %v2361_v6 = vpop.f32.mrf.mxu1 }
 0x1fa   : > { %1900 = vst.msk [vmem:[%s3442_s7 + $0x98] sm:$0xff] %vm1880_vm6, %v1867_v8  ;;  %v1866_v55 = vmax.f32 %v1834_v31, 0.0  ;;  %v1837_v14 = vadd.f32 %v3435_v25, %v1798_v10  ;;  %v1797_v56 = vadd.f32 %v1718_v7, %v1456_v28  ;;  %v1471_v63 = vadd.f32 %v2361_v6, %v3394_v34  ;;  %v1728_v43 = vpop.f32.mrf.mxu0 }
 0x1fb   : > { %v1465_v39 = vpop.f32.mrf.mxu1 }
 0x1fc   : > { %1899 = vst.msk [vmem:[%s3442_s7 + $0x90] sm:$0xff] %vm1880_vm6, %v1866_v55  ;;  %v1869_v12 = vmax.f32 %v1837_v14, 0.0  ;;  %v1836_v17 = vadd.f32 %v3435_v25, %v1797_v56  ;;  %v1800_v61 = vadd.f32 %v2413_v40, %v1471_v63  ;;  %v1466_v45 = vadd.f32 %v1465_v39, %v3396_v51  ;;  %v2416_v36 = vpop.f32.mrf.mxu0 }
 0x1fd   : > { %v2364_v26 = vpop.f32.mrf.mxu1 }
 0x1fe   : > { %1902 = vst.msk [vmem:[%s3442_s7 + $0xa8] sm:$0xff] %vm1880_vm6, %v1869_v12  ;;  %v1868_v57 = vmax.f32 %v1836_v17, 0.0  ;;  %v1839_v48 = vadd.f32 %v3435_v25, %v1800_v61  ;;  %v1799_v34 = vadd.f32 %v1728_v43, %v1466_v45  ;;  %v1481_v49 = vadd.f32 %v2364_v26, %v3400_v23  ;;  %v1738_v47 = vpop.f32.mrf.mxu0 }
 0x1ff   : > { %v1475_v35 = vpop.f32.mrf.mxu1 }
 0x200   : > { %1901 = vst.msk [vmem:[%s3442_s7 + $0xa0] sm:$0xff] %vm1880_vm6, %v1868_v57  ;;  %v1871_v13 = vmax.f32 %v1839_v48, 0.0  ;;  %v1838_v27 = vadd.f32 %v3435_v25, %v1799_v34  ;;  %v1802_v51 = vadd.f32 %v2416_v36, %v1481_v49  ;;  %v1476_v29 = vadd.f32 %v1475_v35, %v3404_v0  ;;  %v2419_v44 = vpop.f32.mrf.mxu0 }
 0x201   : > { %v2367_v20 = vpop.f32.mrf.mxu1 }
 0x202   : > { %1904 = vst.msk [vmem:[%s3442_s7 + $0xb8] sm:$0xff] %vm1880_vm6, %v1871_v13  ;;  %v1870_v37 = vmax.f32 %v1838_v27, 0.0  ;;  %v1841_v54 = vadd.f32 %v3435_v25, %v1802_v51  ;;  %v1801_v23 = vadd.f32 %v1738_v47, %v1476_v29  ;;  %v1491_v33 = vadd.f32 %v2367_v20, %v3408_v53  ;;  %v1748_v18 = vpop.f32.mrf.mxu0 }
 0x203   : > { %v1485_v21 = vpop.f32.mrf.mxu1 }
 0x204   : > { %1903 = vst.msk [vmem:[%s3442_s7 + $0xb0] sm:$0xff] %vm1880_vm6, %v1870_v37  ;;  %v1873_v58 = vmax.f32 %v1841_v54, 0.0  ;;  %v1840_v60 = vadd.f32 %v3435_v25, %v1801_v23  ;;  %v1804_v0 = vadd.f32 %v2419_v44, %v1491_v33  ;;  %v1486_v19 = vadd.f32 %v1485_v21, %v3412_v5  ;;  %v2422_v24 = vpop.f32.mrf.mxu0 }
 0x205   : > { %v2370_v32 = vpop.f32.mrf.mxu1 }
 0x206   : > { %1906 = vst.msk [vmem:[%s3442_s7 + $0xc8] sm:$0xff] %vm1880_vm6, %v1873_v58  ;;  %v1872_v30 = vmax.f32 %v1840_v60, 0.0  ;;  %v1843_v52 = vadd.f32 %v3435_v25, %v1804_v0  ;;  %v1803_v53 = vadd.f32 %v1748_v18, %v1486_v19  ;;  %v1501_v3 = vadd.f32 %v2370_v32, %v3416_v4  ;;  %v1758_v50 = vpop.f32.mrf.mxu0 }
 0x207   : > { %v1495_v15 = vpop.f32.mrf.mxu1 }
 0x208   : > { %1905 = vst.msk [vmem:[%s3442_s7 + $0xc0] sm:$0xff] %vm1880_vm6, %v1872_v30  ;;  %v1875_v22 = vmax.f32 %v1843_v52, 0.0  ;;  %v1842_v1 = vadd.f32 %v3435_v25, %v1803_v53  ;;  %v1806_v5 = vadd.f32 %v2422_v24, %v1501_v3  ;;  %v1496_v38 = vadd.f32 %v1495_v15, %v3420_v62  ;;  %v2425_v11 = vpop.f32.mrf.mxu0 }
 0x209   : > { %v2373_v41 = vpop.f32.mrf.mxu1 }
 0x20a   : > { %1908 = vst.msk [vmem:[%s3442_s7 + $0xd8] sm:$0xff] %vm1880_vm6, %v1875_v22  ;;  %v1874_v42 = vmax.f32 %v1842_v1, 0.0  ;;  %v1845_v4 = vadd.f32 %v3435_v25, %v1806_v5  ;;  %v1805_v59 = vadd.f32 %v1758_v50, %v1496_v38  ;;  %v1511_v2 = vadd.f32 %v2373_v41, %v3424_v9  ;;  %v1768_v10 = vpop.f32.mrf.mxu0 }
 0x20b   : > { %v1505_v7 = vpop.f32.mrf.mxu1 }
 0x20c   : > { %1907 = vst.msk [vmem:[%s3442_s7 + $0xd0] sm:$0xff] %vm1880_vm6, %v1874_v42  ;;  %v1877_v46 = vmax.f32 %v1845_v4, 0.0  ;;  %v1844_v8 = vadd.f32 %v3435_v25, %v1805_v59  ;;  %v1808_v62 = vadd.f32 %v2425_v11, %v1511_v2  ;;  %v1506_v31 = vadd.f32 %v1505_v7, %v3430_v16 }
 0x20e   : > { %1910 = vst.msk [vmem:[%s3442_s7 + $0xe8] sm:$0xff] %vm1880_vm6, %v1877_v46  ;;  %v1876_v28 = vmax.f32 %v1844_v8, 0.0  ;;  %v1847_v40 = vadd.f32 %v3435_v25, %v1808_v62  ;;  %v1807_v6 = vadd.f32 %v1768_v10, %v1506_v31 }
 0x210   : > { %1909 = vst.msk [vmem:[%s3442_s7 + $0xe0] sm:$0xff] %vm1880_vm6, %v1876_v28  ;;  %v1879_v9 = vmax.f32 %v1847_v40, 0.0  ;;  %v1846_v55 = vadd.f32 %v3435_v25, %v1807_v6 }
 0x212   : > { %1912 = vst.msk [vmem:[%s3442_s7 + $0xf8] sm:$0xff] %vm1880_vm6, %v1879_v9  ;;  %v1878_v14 = vmax.f32 %v1846_v55, 0.0 }
 0x214   : > { %1911 = vst.msk [vmem:[%s3442_s7 + $0xf0] sm:$0xff] %vm1880_vm6, %v1878_v14 }
 0x215 PF: > { %s15_s20 = sadd.s32 1, %s2481_s20   ;;  %s3589_s18 = smov %s2477_s19 }
 0x216   : > { %p12_p5 = scmp.ge.s32.totalorder %s15_s20, 4   ;;  %s3590_s19 = smov %s3592_s21 }
 0x218   :  { %14 = sbr.rel (!%p12_p5) target bundleno = 2 (0x2), region = 76 }

</bundles_post_ra>
